<compile_context>
chip_gen: v7x
topology: tpu7x:2x2x1
jax: 0.10.0
libtpu: 0.0.40
codegen_flags: <defaults>
</compile_context>

<pallas_src>
import jax
import jax.numpy as jnp
from jax.experimental import pallas as pl
from jax.experimental.pallas import tpu as pltpu

H1 = 512
H2 = 256
_FC3_PAD = 128  # lane width of the MXU fc3 weight on the fast path


def _device_kind():
    try:
        return jax.devices()[0].device_kind.lower()
    except Exception:
        return ""


_KIND = _device_kind()
_IS_V5E = ("v5e" in _KIND) or ("v5 lite" in _KIND) or ("v5litepod" in _KIND)
_TC_PER_CHIP = 2 if "v7" in _KIND else 1
# bf16 epilogues + MXU fc3 need a bf16 VALU (v6e/v7x); v5e stays on f32/VPU.
_BF16_FAST_DEFAULT = not _IS_V5E


def _round_up(n, m):
    return ((n + m - 1) // m) * m


def _mlp_kernel_fast(x_ref, w1_ref, b1_ref, w2_ref, b2_ref, w3_ref, b3_ref,
                     o_ref):
    """v6e/v7x path: bf16 epilogues, fc3 on the MXU."""
    x = x_ref[...].astype(jnp.bfloat16)              # in-kernel tile cast
    # fc1 + bias + relu (dropout = identity at inference); bf16 epilogue.
    h1 = jnp.dot(x, w1_ref[...], preferred_element_type=jnp.float32)
    h1 = jnp.maximum(h1.astype(jnp.bfloat16) + b1_ref[...], 0)
    # fc2 + bias + relu; bf16 epilogue.
    h2 = jnp.dot(h1, w2_ref[...], preferred_element_type=jnp.float32)
    h2 = jnp.maximum(h2.astype(jnp.bfloat16) + b2_ref[...], 0)
    # fc3 on the MXU against a (H2, 128) zero-padded weight; only column 0
    # carries the real output, and only the (bm, 1) slice is stored.
    h3 = jnp.dot(h2, w3_ref[...], preferred_element_type=jnp.float32)
    logits = h3[:, 0:1] + b3_ref[...]
    o_ref[...] = jax.nn.sigmoid(logits).astype(o_ref.dtype)


def _mlp_kernel_v5e(x_ref, w1_ref, b1_ref, w2_ref, b2_ref, w3_ref, b3_ref,
                    o_ref):
    """v5e path: f32 epilogues (no bf16 VPU), fc3 as VPU mul + XLU reduce."""
    x = x_ref[...].astype(jnp.bfloat16)              # in-kernel tile cast
    h1 = jnp.dot(x, w1_ref[...], preferred_element_type=jnp.float32)
    h1 = jnp.maximum(h1 + b1_ref[...], 0.0)
    h2 = jnp.dot(h1.astype(jnp.bfloat16), w2_ref[...],
                 preferred_element_type=jnp.float32)
    h2 = jnp.maximum(h2 + b2_ref[...], 0.0)
    logits = jnp.sum(h2 * w3_ref[...], axis=-1, keepdims=True) + b3_ref[...]
    o_ref[...] = jax.nn.sigmoid(logits).astype(o_ref.dtype)


def init_params(key, input_dim):
    """nn.Linear-style init (+/- 1/sqrt(fan_in)); weights (in, out)."""
    ks = jax.random.split(key, 6)

    def linear(kw, kb, fan_in, fan_out):
        bound = 1.0 / jnp.sqrt(jnp.float32(fan_in))
        w = jax.random.uniform(kw, (fan_in, fan_out), jnp.float32, -bound, bound)
        b = jax.random.uniform(kb, (1, fan_out), jnp.float32, -bound, bound)
        return w, b

    w1, b1 = linear(ks[0], ks[1], input_dim, H1)
    w2, b2 = linear(ks[2], ks[3], H1, H2)
    w3, b3 = linear(ks[4], ks[5], H2, 1)
    return (w1, b1, w2, b2, w3, b3)


def prepare_params(params, *, bf16_fast=_BF16_FAST_DEFAULT):
    """One-time parameter prep (casts / reshapes / fc3 padding)."""
    w1, b1, w2, b2, w3, b3 = params
    w1c = w1.astype(jnp.bfloat16)
    w2c = w2.astype(jnp.bfloat16)
    b3c = b3.reshape(1, 1).astype(jnp.float32)
    if bf16_fast:
        b1c = b1.reshape(1, H1).astype(jnp.bfloat16)
        b2c = b2.reshape(1, H2).astype(jnp.bfloat16)
        w3c = jnp.zeros((H2, _FC3_PAD), jnp.bfloat16)
        w3c = w3c.at[:, 0].set(w3.reshape(H2).astype(jnp.bfloat16))
    else:
        b1c = b1.reshape(1, H1).astype(jnp.float32)
        b2c = b2.reshape(1, H2).astype(jnp.float32)
        w3c = w3.reshape(1, H2).astype(jnp.float32)
    return (w1c, b1c, w2c, b2c, w3c, b3c)


def anomaly_classifier_forward(x, prepared, *, bm=2048):
    """x: (B, input_dim) float32.  Returns (B, 1) float32 probabilities."""
    w1, b1, w2, b2, w3, b3 = prepared
    B, D = x.shape
    # The fast (bf16-epilogue / MXU-fc3) layout carries w3 as (H2, 128).
    bf16_fast = (tuple(w3.shape) == (H2, _FC3_PAD))

    # Batch tile: multiple of 256, never larger than the padded batch (small
    # batches run as a single grid step).  On v7x, cap bm so there are >= 2
    # grid steps whenever B > 256 and both TensorCores get work.
    bm = max(256, _round_up(bm, 256))
    bm = min(bm, _round_up(B, 256))
    if _TC_PER_CHIP >= 2 and B > 256:
        bm = min(bm, _round_up(pl.cdiv(B, _TC_PER_CHIP), 256))
    B_pad = _round_up(B, bm)
    if B_pad != B:
        x = jnp.pad(x, ((0, B_pad - B), (0, 0)))   # f32 pad; only wrapper op

    kernel = _mlp_kernel_fast if bf16_fast else _mlp_kernel_v5e
    w3_block = (H2, _FC3_PAD) if bf16_fast else (1, H2)

    grid = (B_pad // bm,)
    out = pl.pallas_call(
        kernel,
        out_shape=jax.ShapeDtypeStruct((B_pad, 1), jnp.float32),
        grid_spec=pltpu.PrefetchScalarGridSpec(
            num_scalar_prefetch=0,
            grid=grid,
            in_specs=[
                pl.BlockSpec((bm, D), lambda i: (i, 0)),    # x tile (f32)
                pl.BlockSpec((D, H1), lambda i: (0, 0)),    # W1 (bf16)
                pl.BlockSpec((1, H1), lambda i: (0, 0)),    # b1
                pl.BlockSpec((H1, H2), lambda i: (0, 0)),   # W2 (bf16)
                pl.BlockSpec((1, H2), lambda i: (0, 0)),    # b2
                pl.BlockSpec(w3_block, lambda i: (0, 0)),   # W3
                pl.BlockSpec((1, 1), lambda i: (0, 0)),     # b3 (f32)
            ],
            out_specs=pl.BlockSpec((bm, 1), lambda i: (i, 0)),
        ),
        compiler_params=pltpu.CompilerParams(
            dimension_semantics=("parallel",)),
    )(x, w1, b1, w2, b2, w3, b3)

    return out[:B]


if __name__ == "__main__":
    key = jax.random.PRNGKey(0)
    k_x, k_p = jax.random.split(key)

    batch, input_dim = 8, 32
    x = jax.random.normal(k_x, (batch, input_dim), jnp.float32)
    params = init_params(k_p, input_dim)
    prepared = prepare_params(params)            # chip-appropriate layout

    out = anomaly_classifier_forward(x, prepared)
    out = jax.block_until_ready(out)
    assert out.shape == (batch, 1)

    w1, b1, w2, b2, w3, b3 = params
    bf16_fast = _BF16_FAST_DEFAULT

    # Reference 1: plain-JAX forward matching the kernel's numerics.
    xb = x.astype(jnp.bfloat16)
    w1b, w2b = w1.astype(jnp.bfloat16), w2.astype(jnp.bfloat16)
    if bf16_fast:
        h1 = jnp.dot(xb, w1b, preferred_element_type=jnp.float32)
        h1 = jnp.maximum(h1.astype(jnp.bfloat16) + b1.astype(jnp.bfloat16), 0)
        h2 = jnp.dot(h1, w2b, preferred_element_type=jnp.float32)
        h2 = jnp.maximum(h2.astype(jnp.bfloat16) + b2.astype(jnp.bfloat16), 0)
        logits = jnp.dot(h2, w3.astype(jnp.bfloat16),
                         preferred_element_type=jnp.float32) + b3
    else:
        h1 = jnp.maximum(
            jnp.dot(xb, w1b, preferred_element_type=jnp.float32) + b1, 0.0)
        h2 = jnp.maximum(
            jnp.dot(h1.astype(jnp.bfloat16), w2b,
                    preferred_element_type=jnp.float32) + b2, 0.0)
        logits = h2 @ w3 + b3
    ref_matched = jax.nn.sigmoid(logits)
    assert jnp.allclose(out, ref_matched, atol=5e-3)

    # Reference 2: full f32 forward (PyTorch eval semantics); loose tolerance
    # only accounts for bf16 MXU operands / bf16 epilogues.
    h1f = jnp.maximum(x @ w1 + b1, 0.0)
    h2f = jnp.maximum(h1f @ w2 + b2, 0.0)
    ref_f32 = jax.nn.sigmoid(h2f @ w3 + b3)
    assert jnp.allclose(out, ref_f32, atol=3e-2)

    print("KERNEL_OK")
</pallas_src>

<mosaic_0001>
module attributes {stable_mosaic.version = 11 : i64} {
  func.func @_mlp_kernel_fast(%arg0: i32, %arg1: memref<256x32xf32, #tpu.memory_space<vmem>>, %arg2: memref<32x512xbf16, #tpu.memory_space<vmem>>, %arg3: memref<1x512xbf16, #tpu.memory_space<vmem>>, %arg4: memref<512x256xbf16, #tpu.memory_space<vmem>>, %arg5: memref<1x256xbf16, #tpu.memory_space<vmem>>, %arg6: memref<256x128xbf16, #tpu.memory_space<vmem>>, %arg7: memref<1x1xf32, #tpu.memory_space<vmem>>, %arg8: memref<256x1xf32, #tpu.memory_space<vmem>>) attributes {dimension_semantics = [#tpu.dimension_semantics<parallel>], iteration_bounds = array<i64: 1>, scalar_prefetch = 0 : i64, scratch_operands = 0 : i64, tpu.core_type = #tpu.core_type<tc>, window_params = [{transform_indices = @transform_0, window_bounds = array<i64: 256, 32>}, {pipeline_mode = #tpu.pipeline_mode<synchronous>, transform_indices = @transform_1, window_bounds = array<i64: 32, 512>}, {pipeline_mode = #tpu.pipeline_mode<synchronous>, transform_indices = @transform_2, window_bounds = array<i64: 1, 512>}, {pipeline_mode = #tpu.pipeline_mode<synchronous>, transform_indices = @transform_3, window_bounds = array<i64: 512, 256>}, {pipeline_mode = #tpu.pipeline_mode<synchronous>, transform_indices = @transform_4, window_bounds = array<i64: 1, 256>}, {pipeline_mode = #tpu.pipeline_mode<synchronous>, transform_indices = @transform_5, window_bounds = array<i64: 256, 128>}, {pipeline_mode = #tpu.pipeline_mode<synchronous>, transform_indices = @transform_6, window_bounds = array<i64: 1, 1>}, {transform_indices = @transform_7, window_bounds = array<i64: 256, 1>}]} {
    %c0 = arith.constant 0 : index
    %c0_0 = arith.constant 0 : index
    %0 = vector.load %arg1[%c0, %c0_0] : memref<256x32xf32, #tpu.memory_space<vmem>>, vector<256x32xf32>
    %1 = arith.truncf %0 : vector<256x32xf32> to vector<256x32xbf16>
    %c0_1 = arith.constant 0 : index
    %c0_2 = arith.constant 0 : index
    %2 = vector.load %arg2[%c0_1, %c0_2] : memref<32x512xbf16, #tpu.memory_space<vmem>>, vector<32x512xbf16>
    %cst = arith.constant dense<0.000000e+00> : vector<256x512xf32>
    %3 = tpu.matmul %1, %2, %cst {dimension_numbers = #tpu.dot_dimension_numbers<[1], [0], [0], [1], [0, 0, 1, 1], [], []>} : vector<256x32xbf16>, vector<32x512xbf16>, vector<256x512xf32> -> vector<256x512xf32>
    %4 = arith.truncf %3 : vector<256x512xf32> to vector<256x512xbf16>
    %c0_3 = arith.constant 0 : index
    %c0_4 = arith.constant 0 : index
    %5 = vector.load %arg3[%c0_3, %c0_4] : memref<1x512xbf16, #tpu.memory_space<vmem>>, vector<1x512xbf16>
    %6 = vector.broadcast %5 : vector<1x512xbf16> to vector<256x512xbf16>
    %7 = arith.addf %4, %6 : vector<256x512xbf16>
    %cst_5 = arith.constant 0.000000e+00 : bf16
    %8 = vector.broadcast %cst_5 : bf16 to vector<256x512xbf16>
    %9 = arith.maximumf %7, %8 : vector<256x512xbf16>
    %c0_6 = arith.constant 0 : index
    %c0_7 = arith.constant 0 : index
    %10 = vector.load %arg4[%c0_6, %c0_7] : memref<512x256xbf16, #tpu.memory_space<vmem>>, vector<512x256xbf16>
    %cst_8 = arith.constant dense<0.000000e+00> : vector<256x256xf32>
    %11 = tpu.matmul %9, %10, %cst_8 {dimension_numbers = #tpu.dot_dimension_numbers<[1], [0], [0], [1], [0, 0, 1, 1], [], []>} : vector<256x512xbf16>, vector<512x256xbf16>, vector<256x256xf32> -> vector<256x256xf32>
    %12 = arith.truncf %11 : vector<256x256xf32> to vector<256x256xbf16>
    %c0_9 = arith.constant 0 : index
    %c0_10 = arith.constant 0 : index
    %13 = vector.load %arg5[%c0_9, %c0_10] : memref<1x256xbf16, #tpu.memory_space<vmem>>, vector<1x256xbf16>
    %14 = vector.broadcast %13 : vector<1x256xbf16> to vector<256x256xbf16>
    %15 = arith.addf %12, %14 : vector<256x256xbf16>
    %cst_11 = arith.constant 0.000000e+00 : bf16
    %16 = vector.broadcast %cst_11 : bf16 to vector<256x256xbf16>
    %17 = arith.maximumf %15, %16 : vector<256x256xbf16>
    %c0_12 = arith.constant 0 : index
    %c0_13 = arith.constant 0 : index
    %18 = vector.load %arg6[%c0_12, %c0_13] : memref<256x128xbf16, #tpu.memory_space<vmem>>, vector<256x128xbf16>
    %cst_14 = arith.constant dense<0.000000e+00> : vector<256x128xf32>
    %19 = tpu.matmul %17, %18, %cst_14 {dimension_numbers = #tpu.dot_dimension_numbers<[1], [0], [0], [1], [0, 0, 1, 1], [], []>} : vector<256x256xbf16>, vector<256x128xbf16>, vector<256x128xf32> -> vector<256x128xf32>
    %20 = vector.extract_strided_slice %19 {offsets = [0, 0], sizes = [256, 1], strides = [1, 1]} : vector<256x128xf32> to vector<256x1xf32>
    %c0_15 = arith.constant 0 : index
    %c0_16 = arith.constant 0 : index
    %21 = vector.load %arg7[%c0_15, %c0_16] : memref<1x1xf32, #tpu.memory_space<vmem>>, vector<1x1xf32>
    %22 = vector.broadcast %21 : vector<1x1xf32> to vector<256x1xf32>
    %23 = arith.addf %20, %22 : vector<256x1xf32>
    %24 = arith.negf %23 : vector<256x1xf32>
    %25 = math.exp %24 : vector<256x1xf32>
    %cst_17 = arith.constant 1.000000e+00 : f32
    %26 = vector.broadcast %cst_17 : f32 to vector<256x1xf32>
    %27 = arith.addf %26, %25 : vector<256x1xf32>
    %28 = arith.divf %26, %27 : vector<256x1xf32>
    %c0_18 = arith.constant 0 : index
    %c0_19 = arith.constant 0 : index
    %29 = vector.load %arg8[%c0_18, %c0_19] : memref<256x1xf32, #tpu.memory_space<vmem>>, vector<256x1xf32>
    tpu.vector_store %arg8[%c0_18, %c0_19], %28 {strides = array<i32>} : memref<256x1xf32, #tpu.memory_space<vmem>>, vector<256x1xf32>,
    return
  }
  func.func @transform_0(%arg0: i32) -> (i32, i32) {
    %c0_i32 = arith.constant 0 : i32
    %c0_i32_0 = arith.constant 0 : i32
    return %arg0, %c0_i32 : i32, i32
  }
  func.func @transform_1(%arg0: i32) -> (i32, i32) {
    %c0_i32 = arith.constant 0 : i32
    %c0_i32_0 = arith.constant 0 : i32
    %c0_i32_1 = arith.constant 0 : i32
    return %c0_i32, %c0_i32_0 : i32, i32
  }
  func.func @transform_2(%arg0: i32) -> (i32, i32) {
    %c0_i32 = arith.constant 0 : i32
    %c0_i32_0 = arith.constant 0 : i32
    %c0_i32_1 = arith.constant 0 : i32
    return %c0_i32, %c0_i32_0 : i32, i32
  }
  func.func @transform_3(%arg0: i32) -> (i32, i32) {
    %c0_i32 = arith.constant 0 : i32
    %c0_i32_0 = arith.constant 0 : i32
    %c0_i32_1 = arith.constant 0 : i32
    return %c0_i32, %c0_i32_0 : i32, i32
  }
  func.func @transform_4(%arg0: i32) -> (i32, i32) {
    %c0_i32 = arith.constant 0 : i32
    %c0_i32_0 = arith.constant 0 : i32
    %c0_i32_1 = arith.constant 0 : i32
    return %c0_i32, %c0_i32_0 : i32, i32
  }
  func.func @transform_5(%arg0: i32) -> (i32, i32) {
    %c0_i32 = arith.constant 0 : i32
    %c0_i32_0 = arith.constant 0 : i32
    %c0_i32_1 = arith.constant 0 : i32
    return %c0_i32, %c0_i32_0 : i32, i32
  }
  func.func @transform_6(%arg0: i32) -> (i32, i32) {
    %c0_i32 = arith.constant 0 : i32
    %c0_i32_0 = arith.constant 0 : i32
    %c0_i32_1 = arith.constant 0 : i32
    return %c0_i32, %c0_i32_0 : i32, i32
  }
  func.func @transform_7(%arg0: i32) -> (i32, i32) {
    %c0_i32 = arith.constant 0 : i32
    %c0_i32_0 = arith.constant 0 : i32
    return %arg0, %c0_i32 : i32, i32
  }
}

</mosaic_0001>

<bundles_post_ra>
// kernel: tpu_custom_call.1
= control target key start
LH: loop header
LB: loop body
LE: loop exit
PB: predicated region body
PF: predicated region fallthrough
CT: control target
= control target key end

     0   :  { %s3934_s0 = inlined_call_operand.vmem [shape: f32[256,32], index: 0, kind: input, shape index: {}]   ;;  %s3935_s1 = inlined_call_operand.vmem [shape: bf16[32,512], index: 1, kind: input, shape index: {}]   ;;  %s3936_s2 = inlined_call_operand.vmem [shape: bf16[1,512], index: 2, kind: input, shape index: {}]   ;;  %s3937_s3 = inlined_call_operand.hbm [shape: bf16[512,256], index: 3, kind: input, shape index: {}]   ;;  %s3938_s4 = inlined_call_operand.vmem [shape: bf16[1,256], index: 4, kind: input, shape index: {}]   ;;  %s3939_s5 = inlined_call_operand.vmem [shape: bf16[256,128], index: 5, kind: input, shape index: {}]   ;;  %s3940_s6 = inlined_call_operand.<no memory space> [shape: f32[1,1], index: 6, kind: input, shape index: {}]   ;;  %s3941_s7 = inlined_call_operand.vmem [shape: f32[256,1], index: 7, kind: output, shape index: {}]  }
   0x1   :  { %v12_v0 = vstv %s3940_s6 }
   0x2   :  { %13 = vst [vmem:[#allocation2] sm:$0x1] %v12_v0 }
   0x3   :  { %14 = vsyncpa [#allocation4], 0  ;;  %s2898_s26 = smov [#allocation3]   ;;  %s2874_s30 = scalar_lea.hbm %s3937_s3, 8192 }
   0x4   :  { %s26_s27 = sshll.u32 %s2898_s26, 4  ;;  %p2875_p0 = scmp.ne.s32.totalorder %s3937_s3, %s2874_s30  ;;  %s27_s27 = int_to_ptr.vmem [resolvable:$true] %s26_s27 }
   0x5   :  { %p2878_p1 = scmp.lt.u32.totalorder %s2874_s30, %s3937_s3 }
   0x7   :  { %p2880_p2 = pnand %p2878_p1, %p2875_p0 }
   0x9   :  { %2883 = shalt.err (!%p2880_p2)
}
   0xa   :  { %s2884_s6 = scalar_lea.vmem %s27_s27, 8192  ;;  %p2889_p4 = scmp.lt.s32.totalorder %s27_s27, %s27_s27 }
   0xb   :  { %p2885_p3 = scmp.ne.s32.totalorder %s27_s27, %s2884_s6  ;;  %p2890_p5 = scmp.lt.s32.totalorder %s2884_s6, %s2884_s6 }
   0xd   :  { %p2891_p6 = por %p2890_p5, %p2889_p4 }
   0xf   :  { %p2892_p7 = pnand %p2891_p6, %p2885_p3 }
  0x11   :  { %2895 = shalt.err (!%p2892_p7)
}
  0x12   :  { %s2899_s12 = smov 128   ;;  %s2900_s13 = smov 8  }
  0x13   :  { %32 = dma.hbm_to_vmem [thread:$0]  %s3937_s3, 8192, %s27_s27, [#allocation4], %s2899_s12, %s2899_s12, %s2900_s13  }
  0x14   :  { %2896 = dma.done.wait [#allocation4], 8192  }
  0x15   :  { %2897 = vsyncadd [#allocation4], 4294959104  ;;  %v2901_v1 = vmov 0   ;;  %v2622_v2 = vld [vmem:[%s3935_s1 + $0x4] ss:$16 sps:$4 sm:$0xff]   ;;  %v44_v7 = vld [vmem:[%s3934_s0 + $0x8] sm:$0xff] }
  0x16   :  { %220 = vmatprep.mubr.bf16.mxu0 %v2901_v1  ;;  %300 = vmatprep.mubr.bf16.mxu1 %v2901_v1  ;;  %v2624_v3 = vld [vmem:[%s3935_s1] ss:$16 sps:$4 sm:$0xff]   ;;  %v2625_v4 = vld [vmem:[%s3935_s1 + $0x24] ss:$16 sps:$4 sm:$0xff]   ;;  %vm139_vm0 = vcmask 261120   ;;  %v60_v10 = vld [vmem:[%s3934_s0 + $0x88] sm:$0xff] }
  0x17   :  { %188 = vmatprep.subr.bf16.mxu0 %v2622_v2  ;;  %2549 = vmatprep.subr.bf16.mxu1 %v2622_v2  ;;  %v2627_v5 = vld [vmem:[%s3935_s1 + $0x20] ss:$16 sps:$4 sm:$0xff]   ;;  %v2628_v12 = vld [vmem:[%s3935_s1 + $0x8] ss:$16 sps:$4 sm:$0xff]   ;;  %v2630_v13 = vld [vmem:[%s3935_s1 + $0xc] ss:$16 sps:$4 sm:$0xff]  }
  0x18   :  { %189 = vmatpush1.bf16.msra.mxu0 %v2624_v3  ;;  %v43_v6 = vld [vmem:[%s3934_s0] sm:$0xff]  ;;  %2551 = vmatpush1.bf16.msra.mxu1 %v2624_v3  ;;  %v45_v14 = vld [vmem:[%s3934_s0 + $0x10] sm:$0xff]  ;;  %v46_v15 = vld [vmem:[%s3934_s0 + $0x18] sm:$0xff]  ;;  %vm2244_vm1 = vcmask 7168  }
  0x19   :  { %190 = vmatprep.subr.bf16.mxu0 %v2625_v4  ;;  %2550 = vmatprep.subr.bf16.mxu1 %v2625_v4  ;;  %v2978_v8 = vpack.c.bf16 %v44_v7, %v43_v6  ;;  %v59_v9 = vld [vmem:[%s3934_s0 + $0x80] sm:$0xff]  ;;  %v61_v16 = vld [vmem:[%s3934_s0 + $0x90] sm:$0xff]  ;;  %v62_v17 = vld [vmem:[%s3934_s0 + $0x98] sm:$0xff]  ;;  %v3018_v20 = vpack.c.bf16 %v46_v15, %v45_v14 }
  0x1a   :  { %v2986_v11 = vpack.c.bf16 %v60_v10, %v59_v9  ;;  %v2631_v18 = vld [vmem:[%s3935_s1 + $0x28] ss:$16 sps:$4 sm:$0xff]   ;;  %v2633_v19 = vld [vmem:[%s3935_s1 + $0x2c] ss:$16 sps:$4 sm:$0xff]   ;;  %v3020_v21 = vpack.c.bf16 %v62_v17, %v61_v16  ;;  %v47_v24 = vld [vmem:[%s3934_s0 + $0x20] sm:$0xff] }
  0x1b   :  { %v2634_v22 = vld [vmem:[#allocation3] ss:$8 sps:$4 sm:$0xff]   ;;  %v2636_v23 = vld [vmem:[#allocation3 + $0x4] ss:$8 sps:$4 sm:$0xff]   ;;  %v2639_v25 = vld [vmem:[#allocation3 + $0x14] ss:$8 sps:$4 sm:$0xff]  }
  0x1c   :  { %191 = vmatpush1.bf16.msra.mxu0 %v2627_v5  ;;  %2552 = vmatpush1.bf16.msra.mxu1 %v2627_v5  ;;  %v48_v26 = vld [vmem:[%s3934_s0 + $0x28] sm:$0xff]  ;;  %v63_v27 = vld [vmem:[%s3934_s0 + $0xa0] sm:$0xff]  ;;  %v2637_v29 = vld [vmem:[#allocation3 + $0x10] ss:$8 sps:$4 sm:$0xff]  }
  0x1d   :  { %381 = vmatprep.subr.bf16.mxu1 %v2630_v13  ;;  %v64_v28 = vld [vmem:[%s3934_s0 + $0xa8] sm:$0xff]  ;;  %1204 = vmatprep.subr.bf16.mxu0 %v2636_v23  ;;  %v3040_v30 = vpack.c.bf16 %v48_v26, %v47_v24  ;;  %v49_v34 = vld [vmem:[%s3934_s0 + $0x30] sm:$0xff]  ;;  %v50_v36 = vld [vmem:[%s3934_s0 + $0x38] sm:$0xff] }
  0x1e   :  { %v2642_v31 = vld [vmem:[#allocation3 + $0x24] ss:$8 sps:$4 sm:$0xff]   ;;  %v3042_v32 = vpack.c.bf16 %v64_v28, %v63_v27  ;;  %v2640_v33 = vld [vmem:[#allocation3 + $0x20] ss:$8 sps:$4 sm:$0xff]   ;;  %v2645_v35 = vld [vmem:[#allocation3 + $0x34] ss:$8 sps:$4 sm:$0xff]   ;;  %v3062_v40 = vpack.c.bf16 %v50_v36, %v49_v34 }
  0x1f   :  { %2290 = vmatmul.mubr.msk.bf16.vlgmr.msra.gmra.mrb[0].mxu0 %vm139_vm0, %v2978_v8  ;;  %2298 = vmatmul.mubr.msk.bf16.vlgmr.msra.gmra.mrb[0].mxu1 %vm139_vm0, %v2986_v11  ;;  %v65_v37 = vld [vmem:[%s3934_s0 + $0xb0] sm:$0xff]  ;;  %v66_v38 = vld [vmem:[%s3934_s0 + $0xb8] sm:$0xff]  ;;  %v51_v43 = vld [vmem:[%s3934_s0 + $0x40] sm:$0xff] }
  0x20   :  { %230 = vmatprep.mubr.bf16.mxu0 %v2901_v1  ;;  %310 = vmatprep.mubr.bf16.mxu1 %v2901_v1  ;;  %v2643_v39 = vld [vmem:[#allocation3 + $0x30] ss:$8 sps:$4 sm:$0xff]   ;;  %v2648_v41 = vld [vmem:[#allocation3 + $0x44] ss:$8 sps:$4 sm:$0xff]   ;;  %v3064_v42 = vpack.c.bf16 %v66_v38, %v65_v37  ;;  %v2646_v45 = vld [vmem:[#allocation3 + $0x40] ss:$8 sps:$4 sm:$0xff]  }
  0x21   :  { %382 = vmatpush1.bf16.msra.mxu1 %v2628_v12  ;;  %1205 = vmatpush1.bf16.msra.mxu0 %v2634_v22  ;;  %v52_v44 = vld [vmem:[%s3934_s0 + $0x48] sm:$0xff]  ;;  %v67_v46 = vld [vmem:[%s3934_s0 + $0xc0] sm:$0xff]  ;;  %v2649_v49 = vld [vmem:[#allocation3 + $0x50] ss:$8 sps:$4 sm:$0xff]  }
  0x22   :  { %383 = vmatprep.subr.bf16.mxu1 %v2633_v19  ;;  %1206 = vmatprep.subr.bf16.mxu0 %v2639_v25  ;;  %v68_v47 = vld [vmem:[%s3934_s0 + $0xc8] sm:$0xff]  ;;  %v2651_v48 = vld [vmem:[#allocation3 + $0x54] ss:$8 sps:$4 sm:$0xff]   ;;  %v3084_v51 = vpack.c.bf16 %v52_v44, %v51_v43  ;;  %v2655_v59 = vld [vmem:[#allocation3 + $0x70] ss:$8 sps:$4 sm:$0xff]  }
  0x23   :  { %v2654_v50 = vld [vmem:[#allocation3 + $0x64] ss:$8 sps:$4 sm:$0xff]   ;;  %v3086_v52 = vpack.c.bf16 %v68_v47, %v67_v46  ;;  %v2652_v53 = vld [vmem:[#allocation3 + $0x60] ss:$8 sps:$4 sm:$0xff]   ;;  %v2657_v54 = vld [vmem:[#allocation3 + $0x74] ss:$8 sps:$4 sm:$0xff]  }
  0x24   :  { %v53_v55 = vld [vmem:[%s3934_s0 + $0x50] sm:$0xff]  ;;  %v54_v56 = vld [vmem:[%s3934_s0 + $0x58] sm:$0xff]  ;;  %v2658_v63 = vld [vmem:[#allocation3 + $0x80] ss:$8 sps:$4 sm:$0xff]  }
  0x25   :  { %384 = vmatpush1.bf16.msra.mxu1 %v2631_v18  ;;  %1207 = vmatpush1.bf16.msra.mxu0 %v2637_v29  ;;  %v69_v57 = vld [vmem:[%s3934_s0 + $0xd0] sm:$0xff]  ;;  %v70_v58 = vld [vmem:[%s3934_s0 + $0xd8] sm:$0xff]  ;;  %v3106_v61 = vpack.c.bf16 %v54_v56, %v53_v55  ;;  %v55_v2 = vld [vmem:[%s3934_s0 + $0x60] sm:$0xff] }
  0x26   :  { %1208 = vmatprep.subr.bf16.mxu0 %v2642_v31  ;;  %v2660_v60 = vld [vmem:[#allocation3 + $0x84] ss:$8 sps:$4 sm:$0xff]   ;;  %v3108_v62 = vpack.c.bf16 %v70_v58, %v69_v57  ;;  %v2663_v0 = vld [vmem:[#allocation3 + $0x94] ss:$8 sps:$4 sm:$0xff]   ;;  %v2661_v6 = vld [vmem:[#allocation3 + $0x90] ss:$8 sps:$4 sm:$0xff]  }
  0x27   :  { %2291 = vmatmul.mubr.msk.bf16.gmra.mrb[4].mxu0 %vm139_vm0, %v3018_v20  ;;  %2299 = vmatmul.mubr.msk.bf16.gmra.mrb[4].mxu1 %vm139_vm0, %v3020_v21  ;;  %v56_v3 = vld [vmem:[%s3934_s0 + $0x68] sm:$0xff]  ;;  %v71_v4 = vld [vmem:[%s3934_s0 + $0xe0] sm:$0xff]  ;;  %v57_v14 = vld [vmem:[%s3934_s0 + $0x70] sm:$0xff] }
  0x28   :  { %240 = vmatprep.mubr.bf16.mxu0 %v2901_v1  ;;  %320 = vmatprep.mubr.bf16.mxu1 %v2901_v1  ;;  %v72_v5 = vld [vmem:[%s3934_s0 + $0xe8] sm:$0xff]  ;;  %v81_v9 = vpack.c.bf16 %v56_v3, %v55_v2  ;;  %v2669_v13 = vld [vmem:[#allocation3 + $0xb4] ss:$8 sps:$4 sm:$0xff]   ;;  %v2667_v18 = vld [vmem:[#allocation3 + $0xb0] ss:$8 sps:$4 sm:$0xff]  }
  0x29   :  { %1209 = vmatpush1.bf16.msra.mxu0 %v2640_v33  ;;  %v2666_v7 = vld [vmem:[#allocation3 + $0xa4] ss:$8 sps:$4 sm:$0xff]   ;;  %v3128_v10 = vpack.c.bf16 %v72_v5, %v71_v4  ;;  %v2664_v12 = vld [vmem:[#allocation3 + $0xa0] ss:$8 sps:$4 sm:$0xff]   ;;  %v58_v15 = vld [vmem:[%s3934_s0 + $0x78] sm:$0xff] }
  0x2a   :  { %1210 = vmatprep.subr.bf16.mxu0 %v2645_v35  ;;  %v73_v16 = vld [vmem:[%s3934_s0 + $0xf0] sm:$0xff]  ;;  %v74_v17 = vld [vmem:[%s3934_s0 + $0xf8] sm:$0xff]  ;;  %v82_v19 = vpack.c.bf16 %v58_v15, %v57_v14  ;;  %v2670_v24 = vld [vmem:[#allocation3 + $0xc0] ss:$8 sps:$4 sm:$0xff]  }
  0x2b   :  { %v2672_v22 = vld [vmem:[#allocation3 + $0xc4] ss:$8 sps:$4 sm:$0xff]   ;;  %v90_v23 = vpack.c.bf16 %v74_v17, %v73_v16  ;;  %v2675_v25 = vld [vmem:[#allocation3 + $0xd4] ss:$8 sps:$4 sm:$0xff]   ;;  %v2673_v26 = vld [vmem:[#allocation3 + $0xd0] ss:$8 sps:$4 sm:$0xff]  }
  0x2c   :  { %v2678_v27 = vld [vmem:[#allocation3 + $0xe4] ss:$8 sps:$4 sm:$0xff]   ;;  %v2676_v28 = vld [vmem:[#allocation3 + $0xe0] ss:$8 sps:$4 sm:$0xff]   ;;  %v2681_v29 = vld [vmem:[#allocation3 + $0xf4] ss:$8 sps:$4 sm:$0xff]  }
  0x2d   :  { %1211 = vmatpush1.bf16.msra.mxu0 %v2643_v39  ;;  %v2322_v33 = vld.sshfl [vmem:[%s3936_s2] sm:$0x33 pattern:$0x75316420]  ;;  %v2690_v14 = vld [vmem:[#allocation3 + $0x124] ss:$8 sps:$4 sm:$0xff]  }
  0x2e   :  { %1212 = vmatprep.subr.bf16.mxu0 %v2648_v41  ;;  %v647_v35 = vcombine.high %v2322_v33, %v2322_v33 }
  0x2f   :  { %2292 = vmatmul.mubr.msk.bf16.gmra.mrb[8].mxu0 %vm139_vm0, %v3040_v30  ;;  %2300 = vmatmul.mubr.msk.bf16.gmra.mrb[8].mxu1 %vm139_vm0, %v3042_v32 }
  0x30   :  { %250 = vmatprep.mubr.bf16.mxu0 %v2901_v1  ;;  %330 = vmatprep.mubr.bf16.mxu1 %v2901_v1 }
  0x31   :  { %1213 = vmatpush1.bf16.msra.mxu0 %v2646_v45 }
  0x32   :  { %1214 = vmatprep.subr.bf16.mxu0 %v2651_v48 }
  0x35   :  { %1215 = vmatpush1.bf16.msra.mxu0 %v2649_v49 }
  0x36   :  { %1216 = vmatprep.subr.bf16.mxu0 %v2654_v50 }
  0x37   :  { %2293 = vmatmul.mubr.msk.bf16.gmra.mrb[12].mxu0 %vm139_vm0, %v3062_v40  ;;  %2301 = vmatmul.mubr.msk.bf16.gmra.mrb[12].mxu1 %vm139_vm0, %v3064_v42 }
  0x38   :  { %260 = vmatprep.mubr.bf16.mxu0 %v2901_v1  ;;  %340 = vmatprep.mubr.bf16.mxu1 %v2901_v1 }
  0x39   :  { %1217 = vmatpush1.bf16.msra.mxu0 %v2652_v53 }
  0x3a   :  { %1218 = vmatprep.subr.bf16.mxu0 %v2657_v54 }
  0x3d   :  { %1219 = vmatpush1.bf16.msra.mxu0 %v2655_v59 }
  0x3e   :  { %1220 = vmatprep.subr.bf16.mxu0 %v2660_v60  ;;  %v2682_v60 = vld [vmem:[#allocation3 + $0x100] ss:$8 sps:$4 sm:$0xff]  }
  0x3f   :  { %2294 = vmatmul.mubr.msk.bf16.gmra.mrb[16].mxu0 %vm139_vm0, %v3084_v51  ;;  %2302 = vmatmul.mubr.msk.bf16.gmra.mrb[16].mxu1 %vm139_vm0, %v3086_v52 }
  0x40   :  { %270 = vmatprep.mubr.bf16.mxu0 %v2901_v1  ;;  %350 = vmatprep.mubr.bf16.mxu1 %v2901_v1 }
  0x41   :  { %1221 = vmatpush1.bf16.msra.mxu0 %v2658_v63  ;;  %v2687_v63 = vld [vmem:[#allocation3 + $0x114] ss:$8 sps:$4 sm:$0xff]  }
  0x42   :  { %1222 = vmatprep.subr.bf16.mxu0 %v2663_v0 }
  0x45   :  { %1223 = vmatpush1.bf16.msra.mxu0 %v2661_v6 }
  0x46   :  { %1224 = vmatprep.subr.bf16.mxu0 %v2666_v7 }
  0x47   :  { %2295 = vmatmul.mubr.msk.bf16.gmra.mrb[20].mxu0 %vm139_vm0, %v3106_v61  ;;  %2303 = vmatmul.mubr.msk.bf16.gmra.mrb[20].mxu1 %vm139_vm0, %v3108_v62 }
  0x48   :  { %280 = vmatprep.mubr.bf16.mxu0 %v2901_v1  ;;  %360 = vmatprep.mubr.bf16.mxu1 %v2901_v1 }
  0x49   :  { %1225 = vmatpush1.bf16.msra.mxu0 %v2664_v12 }
  0x4a   :  { %1226 = vmatprep.subr.bf16.mxu0 %v2669_v13 }
  0x4d   :  { %1227 = vmatpush1.bf16.msra.mxu0 %v2667_v18 }
  0x4e   :  { %1228 = vmatprep.subr.bf16.mxu0 %v2672_v22 }
  0x4f   :  { %2296 = vmatmul.mubr.msk.bf16.gmra.mrb[24].mxu0 %vm139_vm0, %v81_v9  ;;  %2304 = vmatmul.mubr.msk.bf16.gmra.mrb[24].mxu1 %vm139_vm0, %v3128_v10 }
  0x50   :  { %290 = vmatprep.mubr.bf16.mxu0 %v2901_v1  ;;  %370 = vmatprep.mubr.bf16.mxu1 %v2901_v1 }
  0x51   :  { %1229 = vmatpush1.bf16.msra.mxu0 %v2670_v24 }
  0x52   :  { %1230 = vmatprep.subr.bf16.mxu0 %v2675_v25 }
  0x55   :  { %1231 = vmatpush1.bf16.msra.mxu0 %v2673_v26  ;;  %v2693_v26 = vld [vmem:[#allocation3 + $0x134] ss:$8 sps:$4 sm:$0xff]  }
  0x56   :  { %1232 = vmatprep.subr.bf16.mxu0 %v2678_v27 }
  0x57   :  { %2297 = vmatmul.mubr.msk.bf16.gmra.mrb[28].mxu0 %vm139_vm0, %v82_v19  ;;  %2305 = vmatmul.mubr.msk.bf16.gmra.mrb[28].mxu1 %vm139_vm0, %v90_v23 }
  0x58   :  { %413 = vmatprep.mubr.bf16.mxu1 %v2901_v1 }
  0x59   :  { %1233 = vmatpush1.bf16.msra.mxu0 %v2676_v28 }
  0x5a   :  { %1234 = vmatprep.subr.bf16.mxu0 %v2681_v29 }
  0x5f   :  { %2306 = vmatmul.mubr.msk.bf16.vlgmr.msra.gmra.mrb[32].mxu1 %vm139_vm0, %v2978_v8  ;;  %v2679_v8 = vld [vmem:[#allocation3 + $0xf0] ss:$8 sps:$4 sm:$0xff]  }
  0x60   :  { %423 = vmatprep.mubr.bf16.mxu1 %v2901_v1  ;;  %1235 = vmatpush1.bf16.msra.mxu0 %v2679_v8 }
  0x67   :  { %2307 = vmatmul.mubr.msk.bf16.gmra.mrb[36].mxu1 %vm139_vm0, %v3018_v20  ;;  %v2684_v20 = vld [vmem:[#allocation3 + $0x104] ss:$8 sps:$4 sm:$0xff]  }
  0x68   :  { %433 = vmatprep.mubr.bf16.mxu1 %v2901_v1  ;;  %1397 = vmatprep.subr.bf16.mxu0 %v2684_v20 }
  0x6f   :  { %2308 = vmatmul.mubr.msk.bf16.gmra.mrb[40].mxu1 %vm139_vm0, %v3040_v30  ;;  %v651_v30 = vlaneseq }
  0x70   :  { %443 = vmatprep.mubr.bf16.mxu1 %v2901_v1 }
  0x77   :  { %2309 = vmatmul.mubr.msk.bf16.gmra.mrb[44].mxu1 %vm139_vm0, %v3062_v40 }
  0x78   :  { %453 = vmatprep.mubr.bf16.mxu1 %v2901_v1 }
  0x7f   :  { %2310 = vmatmul.mubr.msk.bf16.gmra.mrb[48].mxu1 %vm139_vm0, %v3084_v51 }
  0x80   :  { %463 = vmatprep.mubr.bf16.mxu1 %v2901_v1 }
  0x87   :  { %2311 = vmatmul.mubr.msk.bf16.gmra.mrb[52].mxu1 %vm139_vm0, %v3106_v61 }
  0x88   :  { %473 = vmatprep.mubr.bf16.mxu1 %v2901_v1 }
  0x8f   :  { %2312 = vmatmul.mubr.msk.bf16.gmra.mrb[56].mxu1 %vm139_vm0, %v81_v9  ;;  %v2685_v9 = vld [vmem:[#allocation3 + $0x110] ss:$8 sps:$4 sm:$0xff]  }
  0x90   :  { %483 = vmatprep.mubr.bf16.mxu1 %v2901_v1 }
  0x97   :  { %2313 = vmatmul.mubr.msk.bf16.gmra.mrb[60].mxu1 %vm139_vm0, %v82_v19 }
  0x98   :  { %493 = vmatprep.mubr.bf16.mxu1 %v2901_v1 }
  0x9f   :  { %2314 = vmatmul.mubr.msk.bf16.gmra.mrb[64].mxu1 %vm139_vm0, %v2986_v11  ;;  %v2902_v11 = vmov 1966171168  }
  0xa0   :  { %503 = vmatprep.mubr.bf16.mxu1 %v2901_v1 }
  0xa7   :  { %2315 = vmatmul.mubr.msk.bf16.gmra.mrb[68].mxu1 %vm139_vm0, %v3020_v21  ;;  %v649_v21 = vunpack.c.l.s4 %v2902_v11 }
  0xa8   :  { %513 = vmatprep.mubr.bf16.mxu1 %v2901_v1 }
  0xa9   :  { %v650_v31 = vunpack.c.0.s8 %v649_v21 }
  0xaf   :  { %2316 = vmatmul.mubr.msk.bf16.gmra.mrb[72].mxu1 %vm139_vm0, %v3042_v32  ;;  %v652_v32 = vshrl.u32 %v651_v30, 7  ;;  %v2691_v30 = vld [vmem:[#allocation3 + $0x130] ss:$8 sps:$4 sm:$0xff]  }
  0xb0   :  { %523 = vmatprep.mubr.bf16.mxu1 %v2901_v1 }
  0xb1   :  { %v3197_v34 = vsub.s32 %v650_v31, %v652_v32  ;;  %v3207_v39 = vsub.s32 0, %v652_v32 }
  0xb3   :  { %v3200_v36 = vrot.slane %v2322_v33, %v3197_v34  ;;  %v3203_v37 = vrot.slane %v647_v35, %v3197_v34  ;;  %v2696_v35 = vld [vmem:[#allocation3 + $0x144] ss:$8 sps:$4 sm:$0xff]  }
  0xb5   :  { %v665_v38 = vpack.i.b16 %v3200_v36, %v3200_v36  ;;  %v672_v40 = vpack.i.b16 %v3203_v37, %v3203_v37 }
  0xb7   :  { %2317 = vmatmul.mubr.msk.bf16.gmra.mrb[76].mxu1 %vm139_vm0, %v3064_v42  ;;  %v3212_v43 = vrot.slane %v665_v38, %v3207_v39  ;;  %v3215_v46 = vrot.slane %v672_v40, %v3207_v39 }
  0xb8   :  { %533 = vmatprep.mubr.bf16.mxu1 %v2901_v1 }
  0xbf   :  { %2318 = vmatmul.mubr.msk.bf16.gmra.mrb[80].mxu1 %vm139_vm0, %v3086_v52 }
  0xc0   :  { %543 = vmatprep.mubr.bf16.mxu1 %v2901_v1 }
  0xc7   :  { %2319 = vmatmul.mubr.msk.bf16.gmra.mrb[84].mxu1 %vm139_vm0, %v3108_v62 }
  0xc8   :  { %553 = vmatprep.mubr.bf16.mxu1 %v2901_v1 }
  0xcf   :  { %2320 = vmatmul.mubr.msk.bf16.gmra.mrb[88].mxu1 %vm139_vm0, %v3128_v10 }
  0xd0   :  { %563 = vmatprep.mubr.bf16.mxu1 %v2901_v1 }
  0xd7   :  { %2321 = vmatmul.mubr.msk.bf16.gmra.mrb[92].mxu1 %vm139_vm0, %v90_v23  ;;  %v2688_v23 = vld [vmem:[#allocation3 + $0x120] ss:$8 sps:$4 sm:$0xff]  }
  0xf2   :  { %v222_v41 = vpop.f32.mrb[0].mxu0  ;;  %v302_v44 = vpop.f32.mrb[0].mxu1 }
  0xf3   :  { %v224_v42 = vpop.f32.mrb[1].mxu0  ;;  %v3217_v47 = vpop.f32.mrb[1].mxu1 }
  0xf4   :  { %v226_v45 = vpop.f32.mrb[2].mxu0  ;;  %v306_v50 = vpop.f32.mrb[2].mxu1 }
  0xf5   :  { %v574_v48 = vpack.c.bf16 %v226_v45, %v222_v41  ;;  %v228_v49 = vpop.f32.mrb[3].mxu0  ;;  %v606_v52 = vpack.c.bf16 %v306_v50, %v302_v44  ;;  %v3219_v53 = vpop.f32.mrb[3].mxu1 }
  0xf6   :  { %v575_v51 = vpack.c.bf16 %v228_v49, %v224_v42  ;;  %v607_v55 = vpack.c.bf16 %v3219_v53, %v3217_v47 }
  0xf7   :  { %v692_v54 = vadd.bf16 %v3212_v43, %v574_v48  ;;  %v3226_v57 = vadd.bf16 %v3212_v43, %v606_v52  ;;  %v2694_v48 = vld [vmem:[#allocation3 + $0x140] ss:$8 sps:$4 sm:$0xff]  }
  0xf8   :  { %v693_v56 = vadd.bf16 %v3215_v46, %v575_v51  ;;  %v2699_v51 = vld [vmem:[#allocation3 + $0x154] ss:$8 sps:$4 sm:$0xff]  }
  0xf9   :  { %v756_v61 = vmax.bf16 %v2901_v1, %v692_v54 }
  0xfa   :  { %v232_v58 = vpop.f32.mrb[4].mxu0  ;;  %v757_v59 = vmax.bf16 %v2901_v1, %v693_v56  ;;  %v312_v0 = vpop.f32.mrb[4].mxu1 }
  0xfb   :  { %v234_v62 = vpop.f32.mrb[5].mxu0  ;;  %v314_v3 = vpop.f32.mrb[5].mxu1 }
  0xfc   :  { %v236_v2 = vpop.f32.mrb[6].mxu0  ;;  %1236 = vmatprep.mubr.bf16.mxu0 %v757_v59  ;;  %v316_v6 = vpop.f32.mrb[6].mxu1 }
  0xfd   :  { %v578_v4 = vpack.c.bf16 %v236_v2, %v232_v58  ;;  %v238_v5 = vpop.f32.mrb[7].mxu0  ;;  %1237 = vmatmul.mubr.bf16.vlgmr.msra.gmra.mrb[32].mxu0 %v756_v61  ;;  %v610_v10 = vpack.c.bf16 %v316_v6, %v312_v0  ;;  %v318_v12 = vpop.f32.mrb[7].mxu1 }
  0xfe   :  { %v579_v7 = vpack.c.bf16 %v238_v5, %v234_v62  ;;  %1398 = vmatpush1.bf16.msra.mxu0 %v2682_v60  ;;  %v611_v15 = vpack.c.bf16 %v318_v12, %v314_v3  ;;  %v2697_v62 = vld [vmem:[#allocation3 + $0x150] ss:$8 sps:$4 sm:$0xff]   ;;  %v2702_v3 = vld [vmem:[#allocation3 + $0x164] ss:$8 sps:$4 sm:$0xff]   ;;  %v2700_v12 = vld [vmem:[#allocation3 + $0x160] ss:$8 sps:$4 sm:$0xff]  }
  0xff   :  { %v696_v13 = vadd.bf16 %v3212_v43, %v578_v4  ;;  %1399 = vmatprep.subr.bf16.mxu0 %v2687_v63  ;;  %v3233_v17 = vadd.bf16 %v3212_v43, %v610_v10 }
 0x100   :  { %v697_v16 = vadd.bf16 %v3215_v46, %v579_v7  ;;  %v3236_v18 = vadd.bf16 %v3215_v46, %v611_v15  ;;  %v2705_v15 = vld [vmem:[#allocation3 + $0x174] ss:$8 sps:$4 sm:$0xff]  }
 0x101   :  { %v760_v25 = vmax.bf16 %v2901_v1, %v696_v13 }
 0x102   :  { %v242_v19 = vpop.f32.mrb[8].mxu0  ;;  %v761_v22 = vmax.bf16 %v2901_v1, %v697_v16  ;;  %1400 = vmatpush1.bf16.msra.mxu0 %v2685_v9  ;;  %v322_v27 = vpop.f32.mrb[8].mxu1 }
 0x103   :  { %v244_v24 = vpop.f32.mrb[9].mxu0  ;;  %1401 = vmatprep.subr.bf16.mxu0 %v2690_v14  ;;  %v324_v29 = vpop.f32.mrb[9].mxu1 }
 0x104   :  { %v246_v28 = vpop.f32.mrb[10].mxu0  ;;  %1246 = vmatprep.mubr.bf16.mxu0 %v761_v22  ;;  %v326_v11 = vpop.f32.mrb[10].mxu1 }
 0x105   :  { %v582_v8 = vpack.c.bf16 %v246_v28, %v242_v19  ;;  %v248_v20 = vpop.f32.mrb[11].mxu0  ;;  %1247 = vmatmul.mubr.bf16.gmra.mrb[36].mxu0 %v760_v25  ;;  %v614_v31 = vpack.c.bf16 %v326_v11, %v322_v27  ;;  %v328_v32 = vpop.f32.mrb[11].mxu1  ;;  %v2703_v27 = vld [vmem:[#allocation3 + $0x170] ss:$8 sps:$4 sm:$0xff]  }
 0x106   :  { %v583_v21 = vpack.c.bf16 %v248_v20, %v244_v24  ;;  %1402 = vmatpush1.bf16.msra.mxu0 %v2688_v23  ;;  %v615_v38 = vpack.c.bf16 %v328_v32, %v324_v29  ;;  %v2708_v20 = vld [vmem:[#allocation3 + $0x184] ss:$8 sps:$4 sm:$0xff]  }
 0x107   :  { %v700_v33 = vadd.bf16 %v3212_v43, %v582_v8  ;;  %1403 = vmatprep.subr.bf16.mxu0 %v2693_v26  ;;  %v3243_v41 = vadd.bf16 %v3212_v43, %v614_v31 }
 0x108   :  { %v701_v40 = vadd.bf16 %v3215_v46, %v583_v21  ;;  %v3246_v42 = vadd.bf16 %v3215_v46, %v615_v38 }
 0x109   :  { %v764_v50 = vmax.bf16 %v2901_v1, %v700_v33 }
 0x10a   :  { %v252_v44 = vpop.f32.mrb[12].mxu0  ;;  %v765_v45 = vmax.bf16 %v2901_v1, %v701_v40  ;;  %1404 = vmatpush1.bf16.msra.mxu0 %v2691_v30  ;;  %v332_v52 = vpop.f32.mrb[12].mxu1 }
 0x10b   :  { %v254_v49 = vpop.f32.mrb[13].mxu0  ;;  %1405 = vmatprep.subr.bf16.mxu0 %v2696_v35  ;;  %v334_v56 = vpop.f32.mrb[13].mxu1  ;;  %v2706_v35 = vld [vmem:[#allocation3 + $0x180] ss:$8 sps:$4 sm:$0xff]  }
 0x10c   :  { %v256_v54 = vpop.f32.mrb[14].mxu0  ;;  %1256 = vmatprep.mubr.bf16.mxu0 %v765_v45  ;;  %v336_v60 = vpop.f32.mrb[14].mxu1 }
 0x10d   :  { %v586_v58 = vpack.c.bf16 %v256_v54, %v252_v44  ;;  %v258_v59 = vpop.f32.mrb[15].mxu0  ;;  %1257 = vmatmul.mubr.bf16.gmra.mrb[40].mxu0 %v764_v50  ;;  %v618_v63 = vpack.c.bf16 %v336_v60, %v332_v52  ;;  %v338_v0 = vpop.f32.mrb[15].mxu1  ;;  %v2711_v44 = vld [vmem:[#allocation3 + $0x194] ss:$8 sps:$4 sm:$0xff]  }
 0x10e   :  { %v587_v61 = vpack.c.bf16 %v258_v59, %v254_v49  ;;  %1406 = vmatpush1.bf16.msra.mxu0 %v2694_v48  ;;  %v619_v4 = vpack.c.bf16 %v338_v0, %v334_v56  ;;  %v2709_v56 = vld [vmem:[#allocation3 + $0x190] ss:$8 sps:$4 sm:$0xff]  }
 0x10f   :  { %v704_v2 = vadd.bf16 %v3212_v43, %v586_v58  ;;  %1407 = vmatprep.subr.bf16.mxu0 %v2699_v51  ;;  %v3253_v6 = vadd.bf16 %v3212_v43, %v618_v63 }
 0x110   :  { %v705_v5 = vadd.bf16 %v3215_v46, %v587_v61  ;;  %v3256_v7 = vadd.bf16 %v3215_v46, %v619_v4  ;;  %v2714_v61 = vld [vmem:[#allocation3 + $0x1a4] ss:$8 sps:$4 sm:$0xff]  }
 0x111   :  { %v768_v14 = vmax.bf16 %v2901_v1, %v704_v2 }
 0x112   :  { %v262_v9 = vpop.f32.mrb[16].mxu0  ;;  %v769_v10 = vmax.bf16 %v2901_v1, %v705_v5  ;;  %1408 = vmatpush1.bf16.msra.mxu0 %v2697_v62  ;;  %v342_v16 = vpop.f32.mrb[16].mxu1  ;;  %v2712_v5 = vld [vmem:[#allocation3 + $0x1a0] ss:$8 sps:$4 sm:$0xff]  }
 0x113   :  { %v264_v13 = vpop.f32.mrb[17].mxu0  ;;  %1409 = vmatprep.subr.bf16.mxu0 %v2702_v3  ;;  %v344_v22 = vpop.f32.mrb[17].mxu1 }
 0x114   :  { %v266_v19 = vpop.f32.mrb[18].mxu0  ;;  %1266 = vmatprep.mubr.bf16.mxu0 %v769_v10  ;;  %v346_v25 = vpop.f32.mrb[18].mxu1 }
 0x115   :  { %v590_v23 = vpack.c.bf16 %v266_v19, %v262_v9  ;;  %v268_v24 = vpop.f32.mrb[19].mxu0  ;;  %1267 = vmatmul.mubr.bf16.gmra.mrb[44].mxu0 %v768_v14  ;;  %v622_v28 = vpack.c.bf16 %v346_v25, %v342_v16  ;;  %v348_v29 = vpop.f32.mrb[19].mxu1 }
 0x116   :  { %v591_v26 = vpack.c.bf16 %v268_v24, %v264_v13  ;;  %1410 = vmatpush1.bf16.msra.mxu0 %v2700_v12  ;;  %v623_v11 = vpack.c.bf16 %v348_v29, %v344_v22  ;;  %v2717_v12 = vld [vmem:[#allocation3 + $0x1b4] ss:$8 sps:$4 sm:$0xff]   ;;  %v2715_v24 = vld [vmem:[#allocation3 + $0x1b0] ss:$8 sps:$4 sm:$0xff]  }
 0x117   :  { %v708_v8 = vadd.bf16 %v3212_v43, %v590_v23  ;;  %1411 = vmatprep.subr.bf16.mxu0 %v2705_v15  ;;  %v3263_v30 = vadd.bf16 %v3212_v43, %v622_v28  ;;  %v2720_v28 = vld [vmem:[#allocation3 + $0x1c4] ss:$8 sps:$4 sm:$0xff]  }
 0x118   :  { %v709_v21 = vadd.bf16 %v3215_v46, %v591_v26  ;;  %v3266_v31 = vadd.bf16 %v3215_v46, %v623_v11 }
 0x119   :  { %v772_v40 = vmax.bf16 %v2901_v1, %v708_v8 }
 0x11a   :  { %v272_v32 = vpop.f32.mrb[20].mxu0  ;;  %v773_v33 = vmax.bf16 %v2901_v1, %v709_v21  ;;  %1412 = vmatpush1.bf16.msra.mxu0 %v2703_v27  ;;  %v352_v45 = vpop.f32.mrb[20].mxu1 }
 0x11b   :  { %v274_v38 = vpop.f32.mrb[21].mxu0  ;;  %1413 = vmatprep.subr.bf16.mxu0 %v2708_v20  ;;  %v354_v49 = vpop.f32.mrb[21].mxu1 }
 0x11c   :  { %v276_v48 = vpop.f32.mrb[22].mxu0  ;;  %1276 = vmatprep.mubr.bf16.mxu0 %v773_v33  ;;  %v356_v52 = vpop.f32.mrb[22].mxu1  ;;  %v2718_v33 = vld [vmem:[#allocation3 + $0x1c0] ss:$8 sps:$4 sm:$0xff]  }
 0x11d   :  { %v594_v50 = vpack.c.bf16 %v276_v48, %v272_v32  ;;  %v278_v51 = vpop.f32.mrb[23].mxu0  ;;  %1277 = vmatmul.mubr.bf16.gmra.mrb[48].mxu0 %v772_v40  ;;  %v626_v58 = vpack.c.bf16 %v356_v52, %v352_v45  ;;  %v358_v59 = vpop.f32.mrb[23].mxu1  ;;  %v2723_v40 = vld [vmem:[#allocation3 + $0x1d4] ss:$8 sps:$4 sm:$0xff]  }
 0x11e   :  { %v595_v54 = vpack.c.bf16 %v278_v51, %v274_v38  ;;  %1414 = vmatpush1.bf16.msra.mxu0 %v2706_v35  ;;  %v627_v62 = vpack.c.bf16 %v358_v59, %v354_v49 }
 0x11f   :  { %v712_v60 = vadd.bf16 %v3212_v43, %v594_v50  ;;  %1415 = vmatprep.subr.bf16.mxu0 %v2711_v44  ;;  %v3273_v0 = vadd.bf16 %v3212_v43, %v626_v58 }
 0x120   :  { %v713_v63 = vadd.bf16 %v3215_v46, %v595_v54  ;;  %v3276_v2 = vadd.bf16 %v3215_v46, %v627_v62  ;;  %v725_v54 = vadd.bf16 %v3215_v46, %v607_v55  ;;  %v2726_v62 = vld [vmem:[#allocation3 + $0x1e4] ss:$8 sps:$4 sm:$0xff]   ;;  %v2724_v55 = vld [vmem:[#allocation3 + $0x1e0] ss:$8 sps:$4 sm:$0xff]  }
 0x121   :  { %v776_v10 = vmax.bf16 %v2901_v1, %v712_v60 }
 0x122   :  { %v282_v3 = vpop.f32.mrb[24].mxu0  ;;  %v777_v4 = vmax.bf16 %v2901_v1, %v713_v63  ;;  %1416 = vmatpush1.bf16.msra.mxu0 %v2709_v56  ;;  %v362_v13 = vpop.f32.mrb[24].mxu1  ;;  %v2721_v56 = vld [vmem:[#allocation3 + $0x1d0] ss:$8 sps:$4 sm:$0xff]   ;;  %v789_v53 = vmax.bf16 %v2901_v1, %v725_v54 }
 0x123   :  { %v284_v9 = vpop.f32.mrb[25].mxu0  ;;  %1417 = vmatprep.subr.bf16.mxu0 %v2714_v61  ;;  %v364_v15 = vpop.f32.mrb[25].mxu1 }
 0x124   :  { %v286_v14 = vpop.f32.mrb[26].mxu0  ;;  %1286 = vmatprep.mubr.bf16.mxu0 %v777_v4  ;;  %v366_v22 = vpop.f32.mrb[26].mxu1 }
 0x125   :  { %v598_v16 = vpack.c.bf16 %v286_v14, %v282_v3  ;;  %v288_v19 = vpop.f32.mrb[27].mxu0  ;;  %1287 = vmatmul.mubr.bf16.gmra.mrb[52].mxu0 %v776_v10  ;;  %v630_v25 = vpack.c.bf16 %v366_v22, %v362_v13  ;;  %v368_v26 = vpop.f32.mrb[27].mxu1  ;;  %v2729_v10 = vld [vmem:[#allocation3 + $0x1f4] ss:$8 sps:$4 sm:$0xff]   ;;  %v2727_v14 = vld [vmem:[#allocation3 + $0x1f0] ss:$8 sps:$4 sm:$0xff]  }
 0x126   :  { %v599_v23 = vpack.c.bf16 %v288_v19, %v284_v9  ;;  %1418 = vmatpush1.bf16.msra.mxu0 %v2712_v5  ;;  %v631_v29 = vpack.c.bf16 %v368_v26, %v364_v15  ;;  %v788_v19 = vmax.bf16 %v2901_v1, %v3226_v57  ;;  %v792_v57 = vmax.bf16 %v2901_v1, %v3233_v17 }
 0x127   :  { %v716_v27 = vadd.bf16 %v3212_v43, %v598_v16  ;;  %1419 = vmatprep.subr.bf16.mxu0 %v2717_v12  ;;  %v3283_v20 = vadd.bf16 %v3212_v43, %v630_v25  ;;  %v793_v16 = vmax.bf16 %v2901_v1, %v3236_v18  ;;  %v796_v17 = vmax.bf16 %v2901_v1, %v3243_v41 }
 0x128   :  { %v717_v8 = vadd.bf16 %v3215_v46, %v599_v23  ;;  %v3286_v11 = vadd.bf16 %v3215_v46, %v631_v29  ;;  %v800_v41 = vmax.bf16 %v2901_v1, %v3253_v6  ;;  %v2731_v6 = vld [vmem:[%s3939_s5] sm:$0xff]  }
 0x129   :  { %v780_v38 = vmax.bf16 %v2901_v1, %v716_v27  ;;  %v797_v27 = vmax.bf16 %v2901_v1, %v3246_v42  ;;  %v801_v42 = vmax.bf16 %v2901_v1, %v3256_v7  ;;  %v805_v7 = vmax.bf16 %v2901_v1, %v3266_v31  ;;  %v2730_v31 = vld [vmem:[%s3939_s5 + $0x40] sm:$0xff]  }
 0x12a   :  { %v292_v21 = vpop.f32.mrb[28].mxu0  ;;  %v781_v32 = vmax.bf16 %v2901_v1, %v717_v8  ;;  %1420 = vmatpush1.bf16.msra.mxu0 %v2715_v24  ;;  %v372_v44 = vpop.f32.mrb[28].mxu1  ;;  %2437 = vmatprep.subr.bf16.mxu1 %v2730_v31 }
 0x12b   :  { %v294_v35 = vpop.f32.mrb[29].mxu0  ;;  %1421 = vmatprep.subr.bf16.mxu0 %v2720_v28  ;;  %v374_v48 = vpop.f32.mrb[29].mxu1  ;;  %2438 = vmatpush3.bf16.msra.mxu1 %v2731_v6 }
 0x12c   :  { %v296_v45 = vpop.f32.mrb[30].mxu0  ;;  %1296 = vmatprep.mubr.bf16.mxu0 %v781_v32  ;;  %v376_v51 = vpop.f32.mrb[30].mxu1 }
 0x12d   :  { %v602_v49 = vpack.c.bf16 %v296_v45, %v292_v21  ;;  %v298_v50 = vpop.f32.mrb[31].mxu0  ;;  %1297 = vmatmul.mubr.bf16.gmra.mrb[56].mxu0 %v780_v38  ;;  %v634_v58 = vpack.c.bf16 %v376_v51, %v372_v44  ;;  %v378_v59 = vpop.f32.mrb[31].mxu1 }
 0x12e   :  { %v603_v52 = vpack.c.bf16 %v298_v50, %v294_v35  ;;  %1422 = vmatpush1.bf16.msra.mxu0 %v2718_v33  ;;  %v635_v61 = vpack.c.bf16 %v378_v59, %v374_v48  ;;  %v804_v59 = vmax.bf16 %v2901_v1, %v3263_v30  ;;  %v663_v30 = vcombine.high %v3203_v37, %v3203_v37  ;;  %v2732_v37 = vld [vmem:[%s3939_s5 + $0x48] sm:$0xff]  }
 0x12f   :  { %v720_v60 = vadd.bf16 %v3212_v43, %v602_v49  ;;  %1423 = vmatprep.subr.bf16.mxu0 %v2723_v40  ;;  %v3297_v3 = vadd.bf16 %v3212_v43, %v634_v58  ;;  %v809_v58 = vmax.bf16 %v2901_v1, %v3276_v2  ;;  %v813_v2 = vmax.bf16 %v2901_v1, %v3286_v11 }
 0x130   :  { %v721_v63 = vadd.bf16 %v3215_v46, %v603_v52  ;;  %v3300_v4 = vadd.bf16 %v3215_v46, %v635_v61  ;;  %2439 = vmatprep.subr.bf16.mxu1 %v2732_v37  ;;  %v2735_v37 = vld [vmem:[%s3939_s5 + $0x10] sm:$0xff]  }
 0x131   :  { %v784_v5 = vmax.bf16 %v2901_v1, %v720_v60 }
 0x132   :  { %v785_v47 = vmax.bf16 %v2901_v1, %v721_v63  ;;  %1424 = vmatpush1.bf16.msra.mxu0 %v2721_v56  ;;  %v3305_v9 = vpop.f32.mrb[32].mxu1 }
 0x133   :  { %1425 = vmatprep.subr.bf16.mxu0 %v2726_v62  ;;  %v3307_v12 = vpop.f32.mrb[33].mxu1 }
 0x134   :  { %1306 = vmatprep.mubr.bf16.mxu0 %v785_v47  ;;  %v3309_v43 = vpop.f32.mrb[34].mxu1 }
 0x135   :  { %1307 = vmatmul.mubr.bf16.gmra.mrb[60].mxu0 %v784_v5  ;;  %v576_v46 = vpack.c.bf16 %v3309_v43, %v3305_v9  ;;  %v3313_v13 = vpop.f32.mrb[35].mxu1 }
 0x136   :  { %1316 = vmatprep.mubr.bf16.mxu0 %v789_v53  ;;  %1426 = vmatpush1.bf16.msra.mxu0 %v2724_v55  ;;  %v577_v15 = vpack.c.bf16 %v3313_v13, %v3307_v12  ;;  %v808_v55 = vmax.bf16 %v2901_v1, %v3273_v0  ;;  %v2733_v0 = vld [vmem:[%s3939_s5 + $0x8] sm:$0xff]  }
 0x137   :  { %1427 = vmatprep.subr.bf16.mxu0 %v2729_v10  ;;  %2440 = vmatpush3.bf16.msra.mxu1 %v2733_v0  ;;  %v2736_v0 = vld [vmem:[%s3939_s5 + $0x58] sm:$0xff]  }
 0x13a   :  { %1428 = vmatpush1.bf16.msra.mxu0 %v2727_v14  ;;  %v3321_v22 = vpop.f32.mrb[36].mxu1 }
 0x13b   :  { %v3323_v23 = vpop.f32.mrb[37].mxu1 }
 0x13c   :  { %v3325_v24 = vpop.f32.mrb[38].mxu1 }
 0x13d   :  { %1317 = vmatmul.mubr.bf16.gmra.mrb[64].mxu0 %v788_v19  ;;  %v580_v25 = vpack.c.bf16 %v3325_v24, %v3321_v22  ;;  %v3329_v26 = vpop.f32.mrb[39].mxu1 }
 0x13e   :  { %1326 = vmatprep.mubr.bf16.mxu0 %v793_v16  ;;  %v581_v18 = vpack.c.bf16 %v3329_v26, %v3323_v23  ;;  %v686_v16 = vpack.i.b16 %v663_v30, %v663_v30  ;;  %v2737_v23 = vld [vmem:[%s3939_s5 + $0x18] sm:$0xff]   ;;  %v2738_v26 = vld [vmem:[%s3939_s5 + $0x60] sm:$0xff]  }
 0x142   :  { %v3337_v28 = vpop.f32.mrb[40].mxu1 }
 0x143   :  { %v3339_v29 = vpop.f32.mrb[41].mxu1 }
 0x144   :  { %v3341_v8 = vpop.f32.mrb[42].mxu1 }
 0x145   :  { %1327 = vmatmul.mubr.bf16.gmra.mrb[68].mxu0 %v792_v57  ;;  %v584_v21 = vpack.c.bf16 %v3341_v8, %v3337_v28  ;;  %v3345_v32 = vpop.f32.mrb[43].mxu1  ;;  %v817_v57 = vmax.bf16 %v2901_v1, %v3300_v4 }
 0x146   :  { %1336 = vmatprep.mubr.bf16.mxu0 %v797_v27  ;;  %v585_v33 = vpack.c.bf16 %v3345_v32, %v3339_v29  ;;  %v2741_v29 = vld [vmem:[%s3939_s5 + $0x28] sm:$0xff]   ;;  %v2742_v32 = vld [vmem:[%s3939_s5 + $0x70] sm:$0xff]  }
 0x14a   :  { %v3353_v35 = vpop.f32.mrb[44].mxu1 }
 0x14b   :  { %v3355_v38 = vpop.f32.mrb[45].mxu1 }
 0x14c   :  { %v3357_v40 = vpop.f32.mrb[46].mxu1 }
 0x14d   :  { %1337 = vmatmul.mubr.bf16.gmra.mrb[72].mxu0 %v796_v17  ;;  %v588_v44 = vpack.c.bf16 %v3357_v40, %v3353_v35  ;;  %v3361_v45 = vpop.f32.mrb[47].mxu1  ;;  %v812_v17 = vmax.bf16 %v2901_v1, %v3283_v20 }
 0x14e   :  { %1346 = vmatprep.mubr.bf16.mxu0 %v801_v42  ;;  %v589_v48 = vpack.c.bf16 %v3361_v45, %v3355_v38  ;;  %v3430_v42 = vrot.slane %v686_v16, %v3207_v39  ;;  %v2734_v16 = vld [vmem:[%s3939_s5 + $0x50] sm:$0xff]   ;;  %v2745_v38 = vld [vmem:[%s3939_s5 + $0x38] sm:$0xff]  }
 0x14f   :  { %2441 = vmatprep.subr.bf16.mxu1 %v2734_v16 }
 0x150   :  { %v695_v4 = vadd.bf16 %v3430_v42, %v577_v15  ;;  %2442 = vmatpush3.bf16.msra.mxu1 %v2735_v37  ;;  %v703_v16 = vadd.bf16 %v3430_v42, %v585_v33 }
 0x151   :  { %2443 = vmatprep.subr.bf16.mxu1 %v2736_v0 }
 0x152   :  { %v3369_v49 = vpop.f32.mrb[48].mxu1  ;;  %v767_v33 = vmax.bf16 %v2901_v1, %v703_v16 }
 0x153   :  { %v3371_v50 = vpop.f32.mrb[49].mxu1 }
 0x154   :  { %v3373_v51 = vpop.f32.mrb[50].mxu1  ;;  %2444 = vmatpush3.bf16.msra.mxu1 %v2737_v23 }
 0x155   :  { %1347 = vmatmul.mubr.bf16.gmra.mrb[76].mxu0 %v800_v41  ;;  %v592_v52 = vpack.c.bf16 %v3373_v51, %v3369_v49  ;;  %v3377_v54 = vpop.f32.mrb[51].mxu1  ;;  %2445 = vmatprep.subr.bf16.mxu1 %v2738_v26 }
 0x156   :  { %1356 = vmatprep.mubr.bf16.mxu0 %v805_v7  ;;  %v593_v56 = vpack.c.bf16 %v3377_v54, %v3371_v50  ;;  %v662_v7 = vcombine.high %v3200_v36, %v3200_v36 }
 0x158   :  { %v711_v8 = vadd.bf16 %v3430_v42, %v593_v56 }
 0x15a   :  { %v3391_v60 = vpop.f32.mrb[52].mxu1 }
 0x15b   :  { %v3393_v61 = vpop.f32.mrb[53].mxu1 }
 0x15c   :  { %v3395_v62 = vpop.f32.mrb[54].mxu1 }
 0x15d   :  { %1357 = vmatmul.mubr.bf16.gmra.mrb[80].mxu0 %v804_v59  ;;  %v596_v63 = vpack.c.bf16 %v3395_v62, %v3391_v60  ;;  %v3399_v47 = vpop.f32.mrb[55].mxu1  ;;  %v679_v59 = vpack.i.b16 %v662_v7, %v662_v7 }
 0x15e   :  { %1366 = vmatprep.mubr.bf16.mxu0 %v809_v58  ;;  %v597_v53 = vpack.c.bf16 %v3399_v47, %v3393_v61 }
 0x15f   :  { %v3454_v30 = vrot.slane %v679_v59, %v3207_v39  ;;  %v2739_v59 = vld [vmem:[%s3939_s5 + $0x20] sm:$0xff]  }
 0x160   :  { %2446 = vmatpush3.bf16.msra.mxu1 %v2739_v59  ;;  %v715_v35 = vadd.bf16 %v3430_v42, %v597_v53 }
 0x161   :  { %v694_v7 = vadd.bf16 %v3454_v30, %v576_v46  ;;  %v702_v16 = vadd.bf16 %v3454_v30, %v584_v21  ;;  %v714_v53 = vadd.bf16 %v3454_v30, %v596_v63 }
 0x162   :  { %v3409_v5 = vpop.f32.mrb[56].mxu1 }
 0x163   :  { %v3411_v10 = vpop.f32.mrb[57].mxu1  ;;  %v758_v9 = vmax.bf16 %v2901_v1, %v694_v7 }
 0x164   :  { %v3413_v14 = vpop.f32.mrb[58].mxu1 }
 0x165   :  { %1367 = vmatmul.mubr.bf16.gmra.mrb[84].mxu0 %v808_v55  ;;  %v600_v19 = vpack.c.bf16 %v3413_v14, %v3409_v5  ;;  %v3417_v27 = vpop.f32.mrb[59].mxu1  ;;  %v816_v55 = vmax.bf16 %v2901_v1, %v3297_v3  ;;  %v699_v3 = vadd.bf16 %v3430_v42, %v581_v18 }
 0x166   :  { %1376 = vmatprep.mubr.bf16.mxu0 %v813_v2  ;;  %v601_v11 = vpack.c.bf16 %v3417_v27, %v3411_v10  ;;  %v759_v2 = vmax.bf16 %v2901_v1, %v695_v4 }
 0x167   :  { %v763_v18 = vmax.bf16 %v2901_v1, %v699_v3  ;;  %v698_v3 = vadd.bf16 %v3454_v30, %v580_v25  ;;  %v2743_v25 = vld [vmem:[%s3939_s5 + $0x30] sm:$0xff]   ;;  %v718_v63 = vadd.bf16 %v3454_v30, %v600_v19 }
 0x168   :  { %v719_v49 = vadd.bf16 %v3430_v42, %v601_v11 }
 0x169   :  { %v762_v23 = vmax.bf16 %v2901_v1, %v698_v3 }
 0x16a   :  { %v3436_v41 = vpop.f32.mrb[60].mxu1 }
 0x16b   :  { %v3438_v31 = vpop.f32.mrb[61].mxu1 }
 0x16c   :  { %v3440_v6 = vpop.f32.mrb[62].mxu1 }
 0x16d   :  { %1377 = vmatmul.mubr.bf16.gmra.mrb[88].mxu0 %v812_v17  ;;  %v604_v58 = vpack.c.bf16 %v3440_v6, %v3436_v41  ;;  %v3448_v20 = vpop.f32.mrb[63].mxu1 }
 0x16e   :  { %1386 = vmatprep.mubr.bf16.mxu0 %v817_v57  ;;  %v605_v36 = vpack.c.bf16 %v3448_v20, %v3438_v31 }
 0x16f   :  { %v722_v5 = vadd.bf16 %v3454_v30, %v604_v58 }
 0x170   :  { %v723_v27 = vadd.bf16 %v3430_v42, %v605_v36 }
 0x172   :  { %v3458_v12 = vpop.f32.mrb[64].mxu1 }
 0x173   :  { %v3460_v13 = vpop.f32.mrb[65].mxu1 }
 0x174   :  { %v3462_v15 = vpop.f32.mrb[66].mxu1 }
 0x175   :  { %1387 = vmatmul.mubr.bf16.gmra.mrb[92].mxu0 %v816_v55  ;;  %v608_v57 = vpack.c.bf16 %v3462_v15, %v3458_v12  ;;  %v3479_v17 = vpop.f32.mrb[67].mxu1  ;;  %v2740_v55 = vld [vmem:[%s3939_s5 + $0x68] sm:$0xff]  }
 0x176   :  { %1429 = vmatprep.mubr.bf16.mxu0 %v759_v2  ;;  %v609_v4 = vpack.c.bf16 %v3479_v17, %v3460_v13  ;;  %2447 = vmatprep.subr.bf16.mxu1 %v2740_v55 }
 0x177   :  { %2448 = vmatpush3.bf16.msra.mxu1 %v2741_v29  ;;  %v726_v17 = vadd.bf16 %v3454_v30, %v608_v57 }
 0x178   :  { %2449 = vmatprep.subr.bf16.mxu1 %v2742_v32  ;;  %v727_v31 = vadd.bf16 %v3430_v42, %v609_v4 }
 0x179   :  { %v790_v6 = vmax.bf16 %v2901_v1, %v726_v17 }
 0x17a   :  { %v3495_v43 = vpop.f32.mrb[68].mxu1  ;;  %v791_v19 = vmax.bf16 %v2901_v1, %v727_v31 }
 0x17b   :  { %v3497_v46 = vpop.f32.mrb[69].mxu1  ;;  %2450 = vmatpush3.bf16.msra.mxu1 %v2743_v25 }
 0x17c   :  { %v3502_v2 = vpop.f32.mrb[70].mxu1 }
 0x17d   :  { %1430 = vmatmul.mubr.bf16.vlgmr.msra.gmra.mrb[32].mxu0 %v758_v9  ;;  %v612_v37 = vpack.c.bf16 %v3502_v2, %v3495_v43  ;;  %v3513_v0 = vpop.f32.mrb[71].mxu1  ;;  %v707_v9 = vadd.bf16 %v3430_v42, %v589_v48  ;;  %v766_v48 = vmax.bf16 %v2901_v1, %v702_v16  ;;  %v710_v16 = vadd.bf16 %v3454_v30, %v592_v52 }
 0x17e   :  { %1439 = vmatprep.mubr.bf16.mxu0 %v763_v18  ;;  %v613_v7 = vpack.c.bf16 %v3513_v0, %v3497_v46  ;;  %v2744_v18 = vld [vmem:[%s3939_s5 + $0x78] sm:$0xff]  }
 0x17f   :  { %2451 = vmatprep.subr.bf16.mxu1 %v2744_v18  ;;  %v771_v45 = vmax.bf16 %v2901_v1, %v707_v9  ;;  %v775_v18 = vmax.bf16 %v2901_v1, %v711_v8  ;;  %v730_v4 = vadd.bf16 %v3454_v30, %v612_v37 }
 0x180   :  { %2452 = vmatpush3.bf16.msra.mxu1 %v2745_v38  ;;  %v731_v13 = vadd.bf16 %v3430_v42, %v613_v7 }
 0x181   :  { %v794_v15 = vmax.bf16 %v2901_v1, %v730_v4 }
 0x182   :  { %v3529_v22 = vpop.f32.mrb[72].mxu1  ;;  %v795_v41 = vmax.bf16 %v2901_v1, %v731_v13 }
 0x183   :  { %v3531_v24 = vpop.f32.mrb[73].mxu1 }
 0x184   :  { %v3536_v26 = vpop.f32.mrb[74].mxu1 }
 0x185   :  { %1440 = vmatmul.mubr.bf16.gmra.mrb[36].mxu0 %v762_v23  ;;  %v616_v59 = vpack.c.bf16 %v3536_v26, %v3529_v22  ;;  %v3547_v55 = vpop.f32.mrb[75].mxu1  ;;  %v706_v23 = vadd.bf16 %v3454_v30, %v588_v44 }
 0x186   :  { %1449 = vmatprep.mubr.bf16.mxu0 %v767_v33  ;;  %v617_v3 = vpack.c.bf16 %v3547_v55, %v3531_v24 }
 0x187   :  { %v770_v9 = vmax.bf16 %v2901_v1, %v706_v23  ;;  %v734_v46 = vadd.bf16 %v3454_v30, %v616_v59 }
 0x188   :  { %v735_v58 = vadd.bf16 %v3430_v42, %v617_v3 }
 0x189   :  { %v798_v2 = vmax.bf16 %v2901_v1, %v734_v46 }
 0x18a   :  { %v3560_v29 = vpop.f32.mrb[76].mxu1  ;;  %v799_v12 = vmax.bf16 %v2901_v1, %v735_v58 }
 0x18b   :  { %v3562_v32 = vpop.f32.mrb[77].mxu1 }
 0x18c   :  { %v3564_v28 = vpop.f32.mrb[78].mxu1 }
 0x18d   :  { %1450 = vmatmul.mubr.bf16.gmra.mrb[40].mxu0 %v766_v48  ;;  %v620_v21 = vpack.c.bf16 %v3564_v28, %v3560_v29  ;;  %v3572_v33 = vpop.f32.mrb[79].mxu1  ;;  %v774_v48 = vmax.bf16 %v2901_v1, %v710_v16  ;;  %v782_v16 = vmax.bf16 %v2901_v1, %v718_v63 }
 0x18e   :  { %1459 = vmatprep.mubr.bf16.mxu0 %v771_v45  ;;  %v621_v25 = vpack.c.bf16 %v3572_v33, %v3562_v32  ;;  %v779_v45 = vmax.bf16 %v2901_v1, %v715_v35 }
 0x18f   :  { %v738_v0 = vadd.bf16 %v3454_v30, %v620_v21 }
 0x190   :  { %v739_v57 = vadd.bf16 %v3430_v42, %v621_v25 }
 0x191   :  { %v802_v24 = vmax.bf16 %v2901_v1, %v738_v0 }
 0x192   :  { %v3582_v50 = vpop.f32.mrb[80].mxu1  ;;  %v803_v43 = vmax.bf16 %v2901_v1, %v739_v57 }
 0x193   :  { %v3584_v54 = vpop.f32.mrb[81].mxu1 }
 0x194   :  { %v3586_v56 = vpop.f32.mrb[82].mxu1 }
 0x195   :  { %1460 = vmatmul.mubr.bf16.gmra.mrb[44].mxu0 %v770_v9  ;;  %v624_v40 = vpack.c.bf16 %v3586_v56, %v3582_v50  ;;  %v541_v44 = vpop.f32.mrb[83].mxu1  ;;  %v778_v9 = vmax.bf16 %v2901_v1, %v714_v53 }
 0x196   :  { %1469 = vmatprep.mubr.bf16.mxu0 %v775_v18  ;;  %v625_v38 = vpack.c.bf16 %v541_v44, %v3584_v54  ;;  %v783_v18 = vmax.bf16 %v2901_v1, %v719_v49  ;;  %v787_v44 = vmax.bf16 %v2901_v1, %v723_v27  ;;  %v786_v49 = vmax.bf16 %v2901_v1, %v722_v5 }
 0x197   :  { %v742_v26 = vadd.bf16 %v3454_v30, %v624_v40 }
 0x198   :  { %v743_v37 = vadd.bf16 %v3430_v42, %v625_v38  ;;  %v2387_v38 = vld.sshfl [vmem:[%s3938_s4] sm:$0x11 pattern:$0x75316420] }
 0x199   :  { %v806_v55 = vmax.bf16 %v2901_v1, %v742_v26 }
 0x19a   :  { %v3601_v8 = vpop.f32.mrb[84].mxu1  ;;  %v807_v7 = vmax.bf16 %v2901_v1, %v743_v37 }
 0x19b   :  { %v547_v61 = vpop.f32.mrb[85].mxu1 }
 0x19c   :  { %v3603_v47 = vpop.f32.mrb[86].mxu1 }
 0x19d   :  { %1470 = vmatmul.mubr.bf16.gmra.mrb[48].mxu0 %v774_v48  ;;  %v628_v51 = vpack.c.bf16 %v3603_v47, %v3601_v8  ;;  %v551_v52 = vpop.f32.mrb[87].mxu1  ;;  %v1631_v8 = vcombine.high %v2387_v38, %v2387_v38 }
 0x19e   :  { %1479 = vmatprep.mubr.bf16.mxu0 %v779_v45  ;;  %v629_v23 = vpack.c.bf16 %v551_v52, %v547_v61 }
 0x19f   :  { %v746_v29 = vadd.bf16 %v3454_v30, %v628_v51  ;;  %v1645_v47 = vrot.slane %v1631_v8, %v3197_v34 }
 0x1a0   :  { %v747_v22 = vadd.bf16 %v3430_v42, %v629_v23 }
 0x1a1   :  { %v810_v28 = vmax.bf16 %v2901_v1, %v746_v29  ;;  %v1654_v52 = vpack.i.b16 %v1645_v47, %v1645_v47 }
 0x1a2   :  { %v3617_v54 = vpop.f32.mrb[88].mxu1  ;;  %v811_v59 = vmax.bf16 %v2901_v1, %v747_v22 }
 0x1a3   :  { %v557_v35 = vpop.f32.mrb[89].mxu1 }
 0x1a4   :  { %v559_v10 = vpop.f32.mrb[90].mxu1 }
 0x1a5   :  { %1480 = vmatmul.mubr.bf16.gmra.mrb[52].mxu0 %v778_v9  ;;  %v632_v60 = vpack.c.bf16 %v559_v10, %v3617_v54  ;;  %v561_v62 = vpop.f32.mrb[91].mxu1  ;;  %v3706_v9 = vrot.slane %v1654_v52, %v3207_v39 }
 0x1a6   :  { %1489 = vmatprep.mubr.bf16.mxu0 %v783_v18  ;;  %v633_v11 = vpack.c.bf16 %v561_v62, %v557_v35 }
 0x1a7   :  { %v750_v33 = vadd.bf16 %v3454_v30, %v632_v60 }
 0x1a8   :  { %v751_v3 = vadd.bf16 %v3430_v42, %v633_v11 }
 0x1a9   :  { %v814_v50 = vmax.bf16 %v2901_v1, %v750_v33 }
 0x1aa   :  { %v565_v45 = vpop.f32.mrb[92].mxu1  ;;  %v815_v32 = vmax.bf16 %v2901_v1, %v751_v3 }
 0x1ab   :  { %v567_v48 = vpop.f32.mrb[93].mxu1 }
 0x1ac   :  { %v569_v61 = vpop.f32.mrb[94].mxu1 }
 0x1ad   :  { %1490 = vmatmul.mubr.bf16.gmra.mrb[56].mxu0 %v782_v16  ;;  %v636_v20 = vpack.c.bf16 %v569_v61, %v565_v45  ;;  %v571_v36 = vpop.f32.mrb[95].mxu1 }
 0x1ae   :  { %1499 = vmatprep.mubr.bf16.mxu0 %v787_v44  ;;  %v637_v14 = vpack.c.bf16 %v571_v36, %v567_v48 }
 0x1af   :  { %v754_v56 = vadd.bf16 %v3454_v30, %v636_v20 }
 0x1b0   :  { %v755_v21 = vadd.bf16 %v3430_v42, %v637_v14  ;;  %v1638_v42 = vrot.slane %v2387_v38, %v3197_v34 }
 0x1b1   :  { %v818_v40 = vmax.bf16 %v2901_v1, %v754_v56 }
 0x1b2   :  { %v819_v25 = vmax.bf16 %v2901_v1, %v755_v21  ;;  %v1647_v51 = vpack.i.b16 %v1638_v42, %v1638_v42 }
 0x1b4   :  { %v3703_v18 = vrot.slane %v1647_v51, %v3207_v39 }
 0x1b5   :  { %1500 = vmatmul.mubr.bf16.gmra.mrb[60].mxu0 %v786_v49 }
 0x1b6   :  { %1509 = vmatprep.mubr.bf16.mxu0 %v791_v19 }
 0x1bd   :  { %1510 = vmatmul.mubr.bf16.gmra.mrb[64].mxu0 %v790_v6 }
 0x1be   :  { %1519 = vmatprep.mubr.bf16.mxu0 %v795_v41 }
 0x1c5   :  { %1520 = vmatmul.mubr.bf16.gmra.mrb[68].mxu0 %v794_v15 }
 0x1c6   :  { %1529 = vmatprep.mubr.bf16.mxu0 %v799_v12 }
 0x1cd   :  { %1530 = vmatmul.mubr.bf16.gmra.mrb[72].mxu0 %v798_v2 }
 0x1ce   :  { %1539 = vmatprep.mubr.bf16.mxu0 %v803_v43 }
 0x1d5   :  { %1540 = vmatmul.mubr.bf16.gmra.mrb[76].mxu0 %v802_v24 }
 0x1d6   :  { %1549 = vmatprep.mubr.bf16.mxu0 %v807_v7 }
 0x1dd   :  { %1550 = vmatmul.mubr.bf16.gmra.mrb[80].mxu0 %v806_v55 }
 0x1de   :  { %1559 = vmatprep.mubr.bf16.mxu0 %v811_v59 }
 0x1e5   :  { %1560 = vmatmul.mubr.bf16.gmra.mrb[84].mxu0 %v810_v28 }
 0x1e6   :  { %1569 = vmatprep.mubr.bf16.mxu0 %v815_v32 }
 0x1ed   :  { %1570 = vmatmul.mubr.bf16.gmra.mrb[88].mxu0 %v814_v50 }
 0x1ee   :  { %1579 = vmatprep.mubr.bf16.mxu0 %v819_v25 }
 0x1f5   :  { %1580 = vmatmul.mubr.bf16.gmra.mrb[92].mxu0 %v818_v40 }
 0x250   :  { %v1431_v53 = vpop.f32.mrb[32].mxu0 }
 0x251   :  { %v1433_v23 = vpop.f32.mrb[33].mxu0 }
 0x252   :  { %v1435_v30 = vpop.f32.mrb[34].mxu0 }
 0x253   :  { %v1590_v54 = vpack.c.bf16 %v1435_v30, %v1431_v53  ;;  %v1437_v35 = vpop.f32.mrb[35].mxu0 }
 0x254   :  { %v1591_v10 = vpack.c.bf16 %v1437_v35, %v1433_v23 }
 0x255   :  { %v1660_v27 = vadd.bf16 %v3703_v18, %v1590_v54 }
 0x256   :  { %v1661_v60 = vadd.bf16 %v3706_v9, %v1591_v10 }
 0x257   :  { %v1692_v63 = vmax.bf16 %v2901_v1, %v1660_v27 }
 0x258   :  { %v1441_v62 = vpop.f32.mrb[36].mxu0  ;;  %v1693_v34 = vmax.bf16 %v2901_v1, %v1661_v60 }
 0x259   :  { %v1443_v11 = vpop.f32.mrb[37].mxu0 }
 0x25a   :  { %v1445_v44 = vpop.f32.mrb[38].mxu0  ;;  %1884 = vmatprep.mubr.bf16.mxu1 %v1693_v34 }
 0x25b   :  { %v1592_v16 = vpack.c.bf16 %v1445_v44, %v1441_v62  ;;  %v1447_v45 = vpop.f32.mrb[39].mxu0  ;;  %1885 = vmatmul.mubr.bf16.vlgmr.msra.gmra.mrb[96].mxu1 %v1692_v63 }
 0x25c   :  { %v1593_v39 = vpack.c.bf16 %v1447_v45, %v1443_v11 }
 0x25d   :  { %v1662_v48 = vadd.bf16 %v3703_v18, %v1592_v16 }
 0x25e   :  { %v1663_v61 = vadd.bf16 %v3706_v9, %v1593_v39 }
 0x25f   :  { %v1694_v5 = vmax.bf16 %v2901_v1, %v1662_v48 }
 0x260   :  { %v1451_v31 = vpop.f32.mrb[40].mxu0  ;;  %v1695_v20 = vmax.bf16 %v2901_v1, %v1663_v61 }
 0x261   :  { %v1453_v36 = vpop.f32.mrb[41].mxu0 }
 0x262   :  { %v1455_v14 = vpop.f32.mrb[42].mxu0  ;;  %1892 = vmatprep.mubr.bf16.mxu1 %v1695_v20 }
 0x263   :  { %v1594_v19 = vpack.c.bf16 %v1455_v14, %v1451_v31  ;;  %v1457_v49 = vpop.f32.mrb[43].mxu0  ;;  %1893 = vmatmul.mubr.bf16.gmra.mrb[100].mxu1 %v1694_v5 }
 0x264   :  { %v1595_v13 = vpack.c.bf16 %v1457_v49, %v1453_v36 }
 0x265   :  { %v1664_v17 = vadd.bf16 %v3703_v18, %v1594_v19 }
 0x266   :  { %v1665_v41 = vadd.bf16 %v3706_v9, %v1595_v13 }
 0x267   :  { %v1696_v12 = vmax.bf16 %v2901_v1, %v1664_v17 }
 0x268   :  { %v1461_v6 = vpop.f32.mrb[44].mxu0  ;;  %v1697_v58 = vmax.bf16 %v2901_v1, %v1665_v41 }
 0x269   :  { %v1463_v4 = vpop.f32.mrb[45].mxu0 }
 0x26a   :  { %v1465_v15 = vpop.f32.mrb[46].mxu0  ;;  %1900 = vmatprep.mubr.bf16.mxu1 %v1697_v58 }
 0x26b   :  { %v1596_v57 = vpack.c.bf16 %v1465_v15, %v1461_v6  ;;  %v1467_v46 = vpop.f32.mrb[47].mxu0  ;;  %1901 = vmatmul.mubr.bf16.gmra.mrb[104].mxu1 %v1696_v12 }
 0x26c   :  { %v1597_v43 = vpack.c.bf16 %v1467_v46, %v1463_v4 }
 0x26d   :  { %v1666_v2 = vadd.bf16 %v3703_v18, %v1596_v57 }
 0x26e   :  { %v1667_v37 = vadd.bf16 %v3706_v9, %v1597_v43 }
 0x26f   :  { %v1698_v22 = vmax.bf16 %v2901_v1, %v1666_v2 }
 0x270   :  { %v1471_v0 = vpop.f32.mrb[48].mxu0  ;;  %v1699_v7 = vmax.bf16 %v2901_v1, %v1667_v37 }
 0x271   :  { %v1473_v24 = vpop.f32.mrb[49].mxu0 }
 0x272   :  { %v1475_v26 = vpop.f32.mrb[50].mxu0  ;;  %1908 = vmatprep.mubr.bf16.mxu1 %v1699_v7 }
 0x273   :  { %v1598_v59 = vpack.c.bf16 %v1475_v26, %v1471_v0  ;;  %v1477_v55 = vpop.f32.mrb[51].mxu0  ;;  %1909 = vmatmul.mubr.bf16.gmra.mrb[108].mxu1 %v1698_v22 }
 0x274   :  { %v1599_v3 = vpack.c.bf16 %v1477_v55, %v1473_v24 }
 0x275   :  { %v1668_v29 = vadd.bf16 %v3703_v18, %v1598_v59 }
 0x276   :  { %v1669_v32 = vadd.bf16 %v3706_v9, %v1599_v3 }
 0x277   :  { %v1700_v25 = vmax.bf16 %v2901_v1, %v1668_v29 }
 0x278   :  { %v1481_v28 = vpop.f32.mrb[52].mxu0  ;;  %v1701_v21 = vmax.bf16 %v2901_v1, %v1669_v32 }
 0x279   :  { %v1483_v33 = vpop.f32.mrb[53].mxu0 }
 0x27a   :  { %v1485_v50 = vpop.f32.mrb[54].mxu0  ;;  %1916 = vmatprep.mubr.bf16.mxu1 %v1701_v21 }
 0x27b   :  { %v1600_v56 = vpack.c.bf16 %v1485_v50, %v1481_v28  ;;  %v1487_v40 = vpop.f32.mrb[55].mxu0  ;;  %1917 = vmatmul.mubr.bf16.gmra.mrb[112].mxu1 %v1700_v25 }
 0x27c   :  { %v1601_v38 = vpack.c.bf16 %v1487_v40, %v1483_v33 }
 0x27d   :  { %v1670_v8 = vadd.bf16 %v3703_v18, %v1600_v56 }
 0x27e   :  { %v1671_v42 = vadd.bf16 %v3706_v9, %v1601_v38 }
 0x27f   :  { %v1702_v53 = vmax.bf16 %v2901_v1, %v1670_v8 }
 0x280   :  { %v1491_v47 = vpop.f32.mrb[56].mxu0  ;;  %v1703_v51 = vmax.bf16 %v2901_v1, %v1671_v42 }
 0x281   :  { %v1493_v52 = vpop.f32.mrb[57].mxu0 }
 0x282   :  { %v1495_v23 = vpop.f32.mrb[58].mxu0  ;;  %1924 = vmatprep.mubr.bf16.mxu1 %v1703_v51 }
 0x283   :  { %v1602_v30 = vpack.c.bf16 %v1495_v23, %v1491_v47  ;;  %v1497_v54 = vpop.f32.mrb[59].mxu0  ;;  %1925 = vmatmul.mubr.bf16.gmra.mrb[116].mxu1 %v1702_v53 }
 0x284   :  { %v1603_v35 = vpack.c.bf16 %v1497_v54, %v1493_v52 }
 0x285   :  { %v1672_v10 = vadd.bf16 %v3703_v18, %v1602_v30 }
 0x286   :  { %v1673_v27 = vadd.bf16 %v3706_v9, %v1603_v35 }
 0x287   :  { %v1704_v63 = vmax.bf16 %v2901_v1, %v1672_v10 }
 0x288   :  { %v1501_v60 = vpop.f32.mrb[60].mxu0  ;;  %v1705_v62 = vmax.bf16 %v2901_v1, %v1673_v27 }
 0x289   :  { %v1503_v34 = vpop.f32.mrb[61].mxu0 }
 0x28a   :  { %v1505_v11 = vpop.f32.mrb[62].mxu0  ;;  %1932 = vmatprep.mubr.bf16.mxu1 %v1705_v62 }
 0x28b   :  { %v1604_v44 = vpack.c.bf16 %v1505_v11, %v1501_v60  ;;  %v1507_v16 = vpop.f32.mrb[63].mxu0  ;;  %1933 = vmatmul.mubr.bf16.gmra.mrb[120].mxu1 %v1704_v63 }
 0x28c   :  { %v1605_v45 = vpack.c.bf16 %v1507_v16, %v1503_v34 }
 0x28d   :  { %v1674_v39 = vadd.bf16 %v3703_v18, %v1604_v44 }
 0x28e   :  { %v1675_v48 = vadd.bf16 %v3706_v9, %v1605_v45 }
 0x28f   :  { %v1706_v36 = vmax.bf16 %v2901_v1, %v1674_v39 }
 0x290   :  { %v1511_v61 = vpop.f32.mrb[64].mxu0  ;;  %v1707_v31 = vmax.bf16 %v2901_v1, %v1675_v48 }
 0x291   :  { %v1513_v20 = vpop.f32.mrb[65].mxu0 }
 0x292   :  { %v1515_v5 = vpop.f32.mrb[66].mxu0  ;;  %1940 = vmatprep.mubr.bf16.mxu1 %v1707_v31 }
 0x293   :  { %v1606_v14 = vpack.c.bf16 %v1515_v5, %v1511_v61  ;;  %v1517_v19 = vpop.f32.mrb[67].mxu0  ;;  %1941 = vmatmul.mubr.bf16.gmra.mrb[124].mxu1 %v1706_v36 }
 0x294   :  { %v1607_v49 = vpack.c.bf16 %v1517_v19, %v1513_v20 }
 0x295   :  { %v1676_v13 = vadd.bf16 %v3703_v18, %v1606_v14 }
 0x296   :  { %v1677_v17 = vadd.bf16 %v3706_v9, %v1607_v49 }
 0x297   :  { %v1708_v4 = vmax.bf16 %v2901_v1, %v1676_v13 }
 0x298   :  { %v1521_v41 = vpop.f32.mrb[68].mxu0  ;;  %v1709_v6 = vmax.bf16 %v2901_v1, %v1677_v17 }
 0x299   :  { %v1523_v58 = vpop.f32.mrb[69].mxu0 }
 0x29a   :  { %v1525_v12 = vpop.f32.mrb[70].mxu0  ;;  %1948 = vmatprep.mubr.bf16.mxu1 %v1709_v6 }
 0x29b   :  { %v1608_v15 = vpack.c.bf16 %v1525_v12, %v1521_v41  ;;  %v1527_v57 = vpop.f32.mrb[71].mxu0  ;;  %1949 = vmatmul.mubr.bf16.gmra.mrb[128].mxu1 %v1708_v4 }
 0x29c   :  { %v1609_v46 = vpack.c.bf16 %v1527_v57, %v1523_v58 }
 0x29d   :  { %v1678_v43 = vadd.bf16 %v3703_v18, %v1608_v15 }
 0x29e   :  { %v1679_v2 = vadd.bf16 %v3706_v9, %v1609_v46 }
 0x29f   :  { %v1710_v24 = vmax.bf16 %v2901_v1, %v1678_v43 }
 0x2a0   :  { %v1531_v37 = vpop.f32.mrb[72].mxu0  ;;  %v1711_v0 = vmax.bf16 %v2901_v1, %v1679_v2 }
 0x2a1   :  { %v1533_v7 = vpop.f32.mrb[73].mxu0 }
 0x2a2   :  { %v1535_v22 = vpop.f32.mrb[74].mxu0  ;;  %1956 = vmatprep.mubr.bf16.mxu1 %v1711_v0 }
 0x2a3   :  { %v1610_v26 = vpack.c.bf16 %v1535_v22, %v1531_v37  ;;  %v1537_v59 = vpop.f32.mrb[75].mxu0  ;;  %1957 = vmatmul.mubr.bf16.gmra.mrb[132].mxu1 %v1710_v24  ;;  %v3772_v24 = vld [vmem:[#allocation2] ss:$0 sm:$0xff] }
 0x2a4   :  { %v1611_v55 = vpack.c.bf16 %v1537_v59, %v1533_v7 }
 0x2a5   :  { %v1680_v3 = vadd.bf16 %v3703_v18, %v1610_v26 }
 0x2a6   :  { %v1681_v29 = vadd.bf16 %v3706_v9, %v1611_v55 }
 0x2a7   :  { %v1712_v33 = vmax.bf16 %v2901_v1, %v1680_v3 }
 0x2a8   :  { %v1541_v32 = vpop.f32.mrb[76].mxu0  ;;  %v1713_v28 = vmax.bf16 %v2901_v1, %v1681_v29 }
 0x2a9   :  { %v1543_v21 = vpop.f32.mrb[77].mxu0 }
 0x2aa   :  { %v1545_v25 = vpop.f32.mrb[78].mxu0  ;;  %1964 = vmatprep.mubr.bf16.mxu1 %v1713_v28 }
 0x2ab   :  { %v1612_v50 = vpack.c.bf16 %v1545_v25, %v1541_v32  ;;  %v1547_v56 = vpop.f32.mrb[79].mxu0  ;;  %1965 = vmatmul.mubr.bf16.gmra.mrb[136].mxu1 %v1712_v33 }
 0x2ac   :  { %v1613_v40 = vpack.c.bf16 %v1547_v56, %v1543_v21 }
 0x2ad   :  { %v1682_v38 = vadd.bf16 %v3703_v18, %v1612_v50 }
 0x2ae   :  { %v1683_v8 = vadd.bf16 %v3706_v9, %v1613_v40 }
 0x2af   :  { %v1714_v52 = vmax.bf16 %v2901_v1, %v1682_v38 }
 0x2b0   :  { %v1551_v42 = vpop.f32.mrb[80].mxu0  ;;  %v1715_v47 = vmax.bf16 %v2901_v1, %v1683_v8 }
 0x2b1   :  { %v1553_v51 = vpop.f32.mrb[81].mxu0 }
 0x2b2   :  { %v1555_v53 = vpop.f32.mrb[82].mxu0  ;;  %1972 = vmatprep.mubr.bf16.mxu1 %v1715_v47 }
 0x2b3   :  { %v1614_v23 = vpack.c.bf16 %v1555_v53, %v1551_v42  ;;  %v1557_v30 = vpop.f32.mrb[83].mxu0  ;;  %1973 = vmatmul.mubr.bf16.gmra.mrb[140].mxu1 %v1714_v52 }
 0x2b4   :  { %v1615_v54 = vpack.c.bf16 %v1557_v30, %v1553_v51 }
 0x2b5   :  { %v1684_v35 = vadd.bf16 %v3703_v18, %v1614_v23 }
 0x2b6   :  { %v1685_v10 = vadd.bf16 %v3706_v9, %v1615_v54 }
 0x2b7   :  { %v1716_v34 = vmax.bf16 %v2901_v1, %v1684_v35 }
 0x2b8   :  { %v1561_v27 = vpop.f32.mrb[84].mxu0  ;;  %v1717_v60 = vmax.bf16 %v2901_v1, %v1685_v10 }
 0x2b9   :  { %v1563_v62 = vpop.f32.mrb[85].mxu0 }
 0x2ba   :  { %v1565_v63 = vpop.f32.mrb[86].mxu0  ;;  %1980 = vmatprep.mubr.bf16.mxu1 %v1717_v60 }
 0x2bb   :  { %v1616_v11 = vpack.c.bf16 %v1565_v63, %v1561_v27  ;;  %v1567_v44 = vpop.f32.mrb[87].mxu0  ;;  %1981 = vmatmul.mubr.bf16.gmra.mrb[144].mxu1 %v1716_v34 }
 0x2bc   :  { %v1617_v16 = vpack.c.bf16 %v1567_v44, %v1563_v62 }
 0x2bd   :  { %v1686_v45 = vadd.bf16 %v3703_v18, %v1616_v11 }
 0x2be   :  { %v1687_v39 = vadd.bf16 %v3706_v9, %v1617_v16 }
 0x2bf   :  { %v1718_v20 = vmax.bf16 %v2901_v1, %v1686_v45 }
 0x2c0   :  { %v1571_v48 = vpop.f32.mrb[88].mxu0  ;;  %v1719_v61 = vmax.bf16 %v2901_v1, %v1687_v39 }
 0x2c1   :  { %v1573_v31 = vpop.f32.mrb[89].mxu0 }
 0x2c2   :  { %v1575_v36 = vpop.f32.mrb[90].mxu0  ;;  %1988 = vmatprep.mubr.bf16.mxu1 %v1719_v61 }
 0x2c3   :  { %v1618_v5 = vpack.c.bf16 %v1575_v36, %v1571_v48  ;;  %v1577_v14 = vpop.f32.mrb[91].mxu0  ;;  %1989 = vmatmul.mubr.bf16.gmra.mrb[148].mxu1 %v1718_v20 }
 0x2c4   :  { %v1619_v19 = vpack.c.bf16 %v1577_v14, %v1573_v31 }
 0x2c5   :  { %v1688_v49 = vadd.bf16 %v3703_v18, %v1618_v5 }
 0x2c6   :  { %v1689_v13 = vadd.bf16 %v3706_v9, %v1619_v19 }
 0x2c7   :  { %v1720_v58 = vmax.bf16 %v2901_v1, %v1688_v49 }
 0x2c8   :  { %v1581_v17 = vpop.f32.mrb[92].mxu0  ;;  %v1721_v41 = vmax.bf16 %v2901_v1, %v1689_v13 }
 0x2c9   :  { %v1583_v6 = vpop.f32.mrb[93].mxu0 }
 0x2ca   :  { %v1585_v4 = vpop.f32.mrb[94].mxu0  ;;  %1996 = vmatprep.mubr.bf16.mxu1 %v1721_v41 }
 0x2cb   :  { %v1620_v12 = vpack.c.bf16 %v1585_v4, %v1581_v17  ;;  %v1587_v15 = vpop.f32.mrb[95].mxu0  ;;  %1997 = vmatmul.mubr.bf16.gmra.mrb[152].mxu1 %v1720_v58 }
 0x2cc   :  { %v1621_v57 = vpack.c.bf16 %v1587_v15, %v1583_v6 }
 0x2cd   :  { %v1690_v46 = vadd.bf16 %v3703_v18, %v1620_v12 }
 0x2ce   :  { %v1691_v43 = vadd.bf16 %v3706_v9, %v1621_v57 }
 0x2cf   :  { %v1722_v37 = vmax.bf16 %v2901_v1, %v1690_v46 }
 0x2d0   :  { %v1723_v2 = vmax.bf16 %v2901_v1, %v1691_v43 }
 0x2d2   :  { %2004 = vmatprep.mubr.bf16.mxu1 %v1723_v2 }
 0x2d3   :  { %2005 = vmatmul.mubr.bf16.gmra.mrb[156].mxu1 %v1722_v37 }
 0x32e   :  { %v2453_v0 = vpop.f32.mrb[96].mxu1 }
 0x32f   :  { %v2454_v7 = vpop.f32.mrb[97].mxu1 }
 0x330   :  { %v2455_v22 = vadd.f32 %v2454_v7, %v2453_v0  ;;  %v2456_v26 = vpop.f32.mrb[98].mxu1 }
 0x331   :  { %v2457_v59 = vpop.f32.mrb[99].mxu1 }
 0x332   :  { %v2020_v55 = vadd.f32 %v2455_v22, %v3772_v24  ;;  %v2458_v3 = vadd.f32 %v2457_v59, %v2456_v26 }
 0x334   :  { %v2405_v29 = vmul.f32 -1.442695, %v2020_v55  ;;  %v2021_v18 = vadd.f32 %v2458_v3, %v3772_v24 }
 0x336   :  { %2746 = vpow2.f32 %v2405_v29  ;;  %v2406_v9 = vmul.f32 -1.442695, %v2021_v18  ;;  %v2459_v32 = vpop.f32.mrb[100].mxu1 }
 0x337   :  { %v2460_v28 = vpop.f32.mrb[101].mxu1 }
 0x338   :  { %2748 = vpow2.f32 %v2406_v9  ;;  %v2461_v1 = vadd.f32 %v2460_v28, %v2459_v32  ;;  %v2462_v21 = vpop.f32.mrb[102].mxu1 }
 0x339   :  { %v2463_v33 = vpop.f32.mrb[103].mxu1 }
 0x33a   :  { %v2022_v25 = vadd.f32 %v2461_v1, %v3772_v24  ;;  %v2464_v50 = vadd.f32 %v2463_v33, %v2462_v21 }
 0x33c   :  { %v2407_v56 = vmul.f32 -1.442695, %v2022_v25  ;;  %v2023_v40 = vadd.f32 %v2464_v50, %v3772_v24 }
 0x33e   :  { %2750 = vpow2.f32 %v2407_v56  ;;  %v2408_v38 = vmul.f32 -1.442695, %v2023_v40  ;;  %v2465_v8 = vpop.f32.mrb[104].mxu1 }
 0x33f   :  { %v2466_v42 = vpop.f32.mrb[105].mxu1 }
 0x340   :  { %v2747_v47 = vpop.eup %2746  ;;  %2752 = vpow2.f32 %v2408_v38  ;;  %v2467_v51 = vadd.f32 %v2466_v42, %v2465_v8  ;;  %v2468_v52 = vpop.f32.mrb[106].mxu1 }
 0x341   :  { %v2148_v53 = vadd.f32 1.0, %v2747_v47  ;;  %v2469_v23 = vpop.f32.mrb[107].mxu1 }
 0x342   :  { %v2749_v30 = vpop.eup %2748  ;;  %v2024_v54 = vadd.f32 %v2467_v51, %v3772_v24  ;;  %v2470_v35 = vadd.f32 %v2469_v23, %v2468_v52 }
 0x343   :  { %2754 = vrcp.f32 %v2148_v53  ;;  %v2149_v10 = vadd.f32 1.0, %v2749_v30 }
 0x344   :  { %v2409_v27 = vmul.f32 -1.442695, %v2024_v54  ;;  %v2025_v60 = vadd.f32 %v2470_v35, %v3772_v24 }
 0x345   :  { %2756 = vrcp.f32 %v2149_v10 }
 0x346   :  { %2758 = vpow2.f32 %v2409_v27  ;;  %v2410_v62 = vmul.f32 -1.442695, %v2025_v60  ;;  %v2471_v34 = vpop.f32.mrb[108].mxu1 }
 0x347   :  { %v2472_v63 = vpop.f32.mrb[109].mxu1 }
 0x348   :  { %v2751_v11 = vpop.eup %2750  ;;  %2760 = vpow2.f32 %v2410_v62  ;;  %v2473_v44 = vadd.f32 %v2472_v63, %v2471_v34  ;;  %v2474_v16 = vpop.f32.mrb[110].mxu1 }
 0x349   :  { %v2150_v45 = vadd.f32 1.0, %v2751_v11  ;;  %v2475_v39 = vpop.f32.mrb[111].mxu1 }
 0x34a   :  { %v2753_v48 = vpop.eup %2752  ;;  %v2026_v61 = vadd.f32 %v2473_v44, %v3772_v24  ;;  %v2476_v31 = vadd.f32 %v2475_v39, %v2474_v16 }
 0x34b   :  { %2762 = vrcp.f32 %v2150_v45  ;;  %v2151_v20 = vadd.f32 1.0, %v2753_v48 }
 0x34c   :  { %v2411_v36 = vmul.f32 -1.442695, %v2026_v61  ;;  %v2027_v5 = vadd.f32 %v2476_v31, %v3772_v24 }
 0x34d   :  { %v2755_v14 = vpop.eup %2754  ;;  %2764 = vrcp.f32 %v2151_v20 }
 0x34e   :  { %2245 = vst.msk [vmem:[%s3941_s7] sm:$0xff] %vm2244_vm1, %v2755_v14  ;;  %2766 = vpow2.f32 %v2411_v36  ;;  %v2412_v19 = vmul.f32 -1.442695, %v2027_v5  ;;  %v2477_v49 = vpop.f32.mrb[112].mxu1 }
 0x34f   :  { %v2757_v13 = vpop.eup %2756  ;;  %v2478_v17 = vpop.f32.mrb[113].mxu1 }
 0x350   :  { %v2759_v41 = vpop.eup %2758  ;;  %2246 = vst.msk [vmem:[%s3941_s7 + $0x8] sm:$0xff] %vm2244_vm1, %v2757_v13  ;;  %2768 = vpow2.f32 %v2412_v19  ;;  %v2479_v6 = vadd.f32 %v2478_v17, %v2477_v49  ;;  %v2480_v58 = vpop.f32.mrb[114].mxu1 }
 0x351   :  { %v2152_v4 = vadd.f32 1.0, %v2759_v41  ;;  %v2481_v12 = vpop.f32.mrb[115].mxu1 }
 0x352   :  { %v2761_v15 = vpop.eup %2760  ;;  %v2028_v57 = vadd.f32 %v2479_v6, %v3772_v24  ;;  %v2482_v46 = vadd.f32 %v2481_v12, %v2480_v58 }
 0x353   :  { %2770 = vrcp.f32 %v2152_v4  ;;  %v2153_v43 = vadd.f32 1.0, %v2761_v15 }
 0x354   :  { %v2413_v2 = vmul.f32 -1.442695, %v2028_v57  ;;  %v2029_v37 = vadd.f32 %v2482_v46, %v3772_v24 }
 0x355   :  { %v2763_v0 = vpop.eup %2762  ;;  %2772 = vrcp.f32 %v2153_v43 }
 0x356   :  { %2247 = vst.msk [vmem:[%s3941_s7 + $0x10] sm:$0xff] %vm2244_vm1, %v2763_v0  ;;  %2774 = vpow2.f32 %v2413_v2  ;;  %v2414_v7 = vmul.f32 -1.442695, %v2029_v37  ;;  %v2483_v22 = vpop.f32.mrb[116].mxu1 }
 0x357   :  { %v2765_v26 = vpop.eup %2764  ;;  %v2484_v59 = vpop.f32.mrb[117].mxu1 }
 0x358   :  { %v2767_v55 = vpop.eup %2766  ;;  %2248 = vst.msk [vmem:[%s3941_s7 + $0x18] sm:$0xff] %vm2244_vm1, %v2765_v26  ;;  %2776 = vpow2.f32 %v2414_v7  ;;  %v2485_v3 = vadd.f32 %v2484_v59, %v2483_v22  ;;  %v2486_v29 = vpop.f32.mrb[118].mxu1 }
 0x359   :  { %v2154_v18 = vadd.f32 1.0, %v2767_v55  ;;  %v2487_v9 = vpop.f32.mrb[119].mxu1 }
 0x35a   :  { %v2769_v32 = vpop.eup %2768  ;;  %v2030_v28 = vadd.f32 %v2485_v3, %v3772_v24  ;;  %v2488_v1 = vadd.f32 %v2487_v9, %v2486_v29 }
 0x35b   :  { %2778 = vrcp.f32 %v2154_v18  ;;  %v2155_v21 = vadd.f32 1.0, %v2769_v32 }
 0x35c   :  { %v2415_v33 = vmul.f32 -1.442695, %v2030_v28  ;;  %v2031_v25 = vadd.f32 %v2488_v1, %v3772_v24 }
 0x35d   :  { %v2771_v50 = vpop.eup %2770  ;;  %2780 = vrcp.f32 %v2155_v21 }
 0x35e   :  { %2249 = vst.msk [vmem:[%s3941_s7 + $0x20] sm:$0xff] %vm2244_vm1, %v2771_v50  ;;  %2782 = vpow2.f32 %v2415_v33  ;;  %v2416_v56 = vmul.f32 -1.442695, %v2031_v25  ;;  %v2489_v40 = vpop.f32.mrb[120].mxu1 }
 0x35f   :  { %v2773_v38 = vpop.eup %2772  ;;  %v2490_v8 = vpop.f32.mrb[121].mxu1 }
 0x360   :  { %v2775_v42 = vpop.eup %2774  ;;  %2250 = vst.msk [vmem:[%s3941_s7 + $0x28] sm:$0xff] %vm2244_vm1, %v2773_v38  ;;  %2784 = vpow2.f32 %v2416_v56  ;;  %v2491_v47 = vadd.f32 %v2490_v8, %v2489_v40  ;;  %v2492_v51 = vpop.f32.mrb[122].mxu1 }
 0x361   :  { %v2156_v52 = vadd.f32 1.0, %v2775_v42  ;;  %v2493_v53 = vpop.f32.mrb[123].mxu1 }
 0x362   :  { %v2777_v23 = vpop.eup %2776  ;;  %v2032_v30 = vadd.f32 %v2491_v47, %v3772_v24  ;;  %v2494_v54 = vadd.f32 %v2493_v53, %v2492_v51 }
 0x363   :  { %2786 = vrcp.f32 %v2156_v52  ;;  %v2157_v35 = vadd.f32 1.0, %v2777_v23 }
 0x364   :  { %v2417_v10 = vmul.f32 -1.442695, %v2032_v30  ;;  %v2033_v27 = vadd.f32 %v2494_v54, %v3772_v24 }
 0x365   :  { %v2779_v60 = vpop.eup %2778  ;;  %2788 = vrcp.f32 %v2157_v35 }
 0x366   :  { %2251 = vst.msk [vmem:[%s3941_s7 + $0x30] sm:$0xff] %vm2244_vm1, %v2779_v60  ;;  %2790 = vpow2.f32 %v2417_v10  ;;  %v2418_v62 = vmul.f32 -1.442695, %v2033_v27  ;;  %v2495_v34 = vpop.f32.mrb[124].mxu1 }
 0x367   :  { %v2781_v63 = vpop.eup %2780  ;;  %v2496_v11 = vpop.f32.mrb[125].mxu1 }
 0x368   :  { %v2783_v44 = vpop.eup %2782  ;;  %2252 = vst.msk [vmem:[%s3941_s7 + $0x38] sm:$0xff] %vm2244_vm1, %v2781_v63  ;;  %2792 = vpow2.f32 %v2418_v62  ;;  %v2497_v16 = vadd.f32 %v2496_v11, %v2495_v34  ;;  %v2498_v45 = vpop.f32.mrb[126].mxu1 }
 0x369   :  { %v2158_v39 = vadd.f32 1.0, %v2783_v44  ;;  %v2499_v48 = vpop.f32.mrb[127].mxu1 }
 0x36a   :  { %v2785_v61 = vpop.eup %2784  ;;  %v2034_v31 = vadd.f32 %v2497_v16, %v3772_v24  ;;  %v2500_v20 = vadd.f32 %v2499_v48, %v2498_v45 }
 0x36b   :  { %2794 = vrcp.f32 %v2158_v39  ;;  %v2159_v36 = vadd.f32 1.0, %v2785_v61 }
 0x36c   :  { %v2419_v5 = vmul.f32 -1.442695, %v2034_v31  ;;  %v2035_v14 = vadd.f32 %v2500_v20, %v3772_v24 }
 0x36d   :  { %v2787_v19 = vpop.eup %2786  ;;  %2796 = vrcp.f32 %v2159_v36 }
 0x36e   :  { %2253 = vst.msk [vmem:[%s3941_s7 + $0x40] sm:$0xff] %vm2244_vm1, %v2787_v19  ;;  %2798 = vpow2.f32 %v2419_v5  ;;  %v2420_v49 = vmul.f32 -1.442695, %v2035_v14  ;;  %v2501_v13 = vpop.f32.mrb[128].mxu1 }
 0x36f   :  { %v2789_v17 = vpop.eup %2788  ;;  %v2502_v41 = vpop.f32.mrb[129].mxu1 }
 0x370   :  { %v2791_v6 = vpop.eup %2790  ;;  %2254 = vst.msk [vmem:[%s3941_s7 + $0x48] sm:$0xff] %vm2244_vm1, %v2789_v17  ;;  %2800 = vpow2.f32 %v2420_v49  ;;  %v2503_v58 = vadd.f32 %v2502_v41, %v2501_v13  ;;  %v2504_v4 = vpop.f32.mrb[130].mxu1 }
 0x371   :  { %v2160_v12 = vadd.f32 1.0, %v2791_v6  ;;  %v2505_v15 = vpop.f32.mrb[131].mxu1 }
 0x372   :  { %v2793_v57 = vpop.eup %2792  ;;  %v2036_v46 = vadd.f32 %v2503_v58, %v3772_v24  ;;  %v2506_v43 = vadd.f32 %v2505_v15, %v2504_v4 }
 0x373   :  { %2802 = vrcp.f32 %v2160_v12  ;;  %v2161_v2 = vadd.f32 1.0, %v2793_v57 }
 0x374   :  { %v2421_v37 = vmul.f32 -1.442695, %v2036_v46  ;;  %v2037_v0 = vadd.f32 %v2506_v43, %v3772_v24 }
 0x375   :  { %v2795_v7 = vpop.eup %2794  ;;  %2804 = vrcp.f32 %v2161_v2 }
 0x376   :  { %2255 = vst.msk [vmem:[%s3941_s7 + $0x50] sm:$0xff] %vm2244_vm1, %v2795_v7  ;;  %2806 = vpow2.f32 %v2421_v37  ;;  %v2422_v22 = vmul.f32 -1.442695, %v2037_v0  ;;  %v2507_v26 = vpop.f32.mrb[132].mxu1 }
 0x377   :  { %v2797_v59 = vpop.eup %2796  ;;  %v2508_v55 = vpop.f32.mrb[133].mxu1 }
 0x378   :  { %v2799_v3 = vpop.eup %2798  ;;  %2256 = vst.msk [vmem:[%s3941_s7 + $0x58] sm:$0xff] %vm2244_vm1, %v2797_v59  ;;  %2808 = vpow2.f32 %v2422_v22  ;;  %v2509_v29 = vadd.f32 %v2508_v55, %v2507_v26  ;;  %v2510_v18 = vpop.f32.mrb[134].mxu1 }
 0x379   :  { %v2162_v9 = vadd.f32 1.0, %v2799_v3  ;;  %v2511_v32 = vpop.f32.mrb[135].mxu1 }
 0x37a   :  { %v2801_v28 = vpop.eup %2800  ;;  %v2038_v1 = vadd.f32 %v2509_v29, %v3772_v24  ;;  %v2512_v21 = vadd.f32 %v2511_v32, %v2510_v18 }
 0x37b   :  { %2810 = vrcp.f32 %v2162_v9  ;;  %v2163_v33 = vadd.f32 1.0, %v2801_v28 }
 0x37c   :  { %v2423_v25 = vmul.f32 -1.442695, %v2038_v1  ;;  %v2039_v50 = vadd.f32 %v2512_v21, %v3772_v24 }
 0x37d   :  { %v2803_v56 = vpop.eup %2802  ;;  %2812 = vrcp.f32 %v2163_v33 }
 0x37e   :  { %2257 = vst.msk [vmem:[%s3941_s7 + $0x60] sm:$0xff] %vm2244_vm1, %v2803_v56  ;;  %2814 = vpow2.f32 %v2423_v25  ;;  %v2424_v40 = vmul.f32 -1.442695, %v2039_v50  ;;  %v2513_v38 = vpop.f32.mrb[136].mxu1 }
 0x37f   :  { %v2805_v8 = vpop.eup %2804  ;;  %v2514_v42 = vpop.f32.mrb[137].mxu1 }
 0x380   :  { %v2807_v47 = vpop.eup %2806  ;;  %2258 = vst.msk [vmem:[%s3941_s7 + $0x68] sm:$0xff] %vm2244_vm1, %v2805_v8  ;;  %2816 = vpow2.f32 %v2424_v40  ;;  %v2515_v51 = vadd.f32 %v2514_v42, %v2513_v38  ;;  %v2516_v52 = vpop.f32.mrb[138].mxu1 }
 0x381   :  { %v2164_v53 = vadd.f32 1.0, %v2807_v47  ;;  %v2517_v23 = vpop.f32.mrb[139].mxu1 }
 0x382   :  { %v2809_v30 = vpop.eup %2808  ;;  %v2040_v54 = vadd.f32 %v2515_v51, %v3772_v24  ;;  %v2518_v35 = vadd.f32 %v2517_v23, %v2516_v52 }
 0x383   :  { %2818 = vrcp.f32 %v2164_v53  ;;  %v2165_v10 = vadd.f32 1.0, %v2809_v30 }
 0x384   :  { %v2425_v27 = vmul.f32 -1.442695, %v2040_v54  ;;  %v2041_v60 = vadd.f32 %v2518_v35, %v3772_v24 }
 0x385   :  { %v2811_v62 = vpop.eup %2810  ;;  %2820 = vrcp.f32 %v2165_v10 }
 0x386   :  { %2259 = vst.msk [vmem:[%s3941_s7 + $0x70] sm:$0xff] %vm2244_vm1, %v2811_v62  ;;  %2822 = vpow2.f32 %v2425_v27  ;;  %v2426_v34 = vmul.f32 -1.442695, %v2041_v60  ;;  %v2519_v63 = vpop.f32.mrb[140].mxu1 }
 0x387   :  { %v2813_v11 = vpop.eup %2812  ;;  %v2520_v44 = vpop.f32.mrb[141].mxu1 }
 0x388   :  { %v2815_v16 = vpop.eup %2814  ;;  %2260 = vst.msk [vmem:[%s3941_s7 + $0x78] sm:$0xff] %vm2244_vm1, %v2813_v11  ;;  %2824 = vpow2.f32 %v2426_v34  ;;  %v2521_v45 = vadd.f32 %v2520_v44, %v2519_v63  ;;  %v2522_v39 = vpop.f32.mrb[142].mxu1 }
 0x389   :  { %v2166_v48 = vadd.f32 1.0, %v2815_v16  ;;  %v2523_v61 = vpop.f32.mrb[143].mxu1 }
 0x38a   :  { %v2817_v31 = vpop.eup %2816  ;;  %v2042_v20 = vadd.f32 %v2521_v45, %v3772_v24  ;;  %v2524_v36 = vadd.f32 %v2523_v61, %v2522_v39 }
 0x38b   :  { %2826 = vrcp.f32 %v2166_v48  ;;  %v2167_v5 = vadd.f32 1.0, %v2817_v31 }
 0x38c   :  { %v2427_v14 = vmul.f32 -1.442695, %v2042_v20  ;;  %v2043_v19 = vadd.f32 %v2524_v36, %v3772_v24 }
 0x38d   :  { %v2819_v49 = vpop.eup %2818  ;;  %2828 = vrcp.f32 %v2167_v5 }
 0x38e   :  { %2261 = vst.msk [vmem:[%s3941_s7 + $0x80] sm:$0xff] %vm2244_vm1, %v2819_v49  ;;  %2830 = vpow2.f32 %v2427_v14  ;;  %v2428_v13 = vmul.f32 -1.442695, %v2043_v19  ;;  %v2525_v17 = vpop.f32.mrb[144].mxu1 }
 0x38f   :  { %v2821_v41 = vpop.eup %2820  ;;  %v2526_v6 = vpop.f32.mrb[145].mxu1 }
 0x390   :  { %v2823_v58 = vpop.eup %2822  ;;  %2262 = vst.msk [vmem:[%s3941_s7 + $0x88] sm:$0xff] %vm2244_vm1, %v2821_v41  ;;  %2832 = vpow2.f32 %v2428_v13  ;;  %v2527_v4 = vadd.f32 %v2526_v6, %v2525_v17  ;;  %v2528_v12 = vpop.f32.mrb[146].mxu1 }
 0x391   :  { %v2168_v15 = vadd.f32 1.0, %v2823_v58  ;;  %v2529_v57 = vpop.f32.mrb[147].mxu1 }
 0x392   :  { %v2825_v46 = vpop.eup %2824  ;;  %v2044_v43 = vadd.f32 %v2527_v4, %v3772_v24  ;;  %v2530_v2 = vadd.f32 %v2529_v57, %v2528_v12 }
 0x393   :  { %2834 = vrcp.f32 %v2168_v15  ;;  %v2169_v37 = vadd.f32 1.0, %v2825_v46 }
 0x394   :  { %v2429_v0 = vmul.f32 -1.442695, %v2044_v43  ;;  %v2045_v7 = vadd.f32 %v2530_v2, %v3772_v24 }
 0x395   :  { %v2827_v22 = vpop.eup %2826  ;;  %2836 = vrcp.f32 %v2169_v37 }
 0x396   :  { %2263 = vst.msk [vmem:[%s3941_s7 + $0x90] sm:$0xff] %vm2244_vm1, %v2827_v22  ;;  %2838 = vpow2.f32 %v2429_v0  ;;  %v2430_v26 = vmul.f32 -1.442695, %v2045_v7  ;;  %v2531_v59 = vpop.f32.mrb[148].mxu1 }
 0x397   :  { %v2829_v55 = vpop.eup %2828  ;;  %v2532_v3 = vpop.f32.mrb[149].mxu1 }
 0x398   :  { %v2831_v29 = vpop.eup %2830  ;;  %2264 = vst.msk [vmem:[%s3941_s7 + $0x98] sm:$0xff] %vm2244_vm1, %v2829_v55  ;;  %2840 = vpow2.f32 %v2430_v26  ;;  %v2533_v18 = vadd.f32 %v2532_v3, %v2531_v59  ;;  %v2534_v9 = vpop.f32.mrb[150].mxu1 }
 0x399   :  { %v2170_v32 = vadd.f32 1.0, %v2831_v29  ;;  %v2535_v28 = vpop.f32.mrb[151].mxu1 }
 0x39a   :  { %v2833_v1 = vpop.eup %2832  ;;  %v2046_v21 = vadd.f32 %v2533_v18, %v3772_v24  ;;  %v2536_v33 = vadd.f32 %v2535_v28, %v2534_v9 }
 0x39b   :  { %2842 = vrcp.f32 %v2170_v32  ;;  %v2171_v25 = vadd.f32 1.0, %v2833_v1 }
 0x39c   :  { %v2431_v50 = vmul.f32 -1.442695, %v2046_v21  ;;  %v2047_v56 = vadd.f32 %v2536_v33, %v3772_v24 }
 0x39d   :  { %v2835_v40 = vpop.eup %2834  ;;  %2844 = vrcp.f32 %v2171_v25 }
 0x39e   :  { %2265 = vst.msk [vmem:[%s3941_s7 + $0xa0] sm:$0xff] %vm2244_vm1, %v2835_v40  ;;  %2846 = vpow2.f32 %v2431_v50  ;;  %v2432_v38 = vmul.f32 -1.442695, %v2047_v56  ;;  %v2537_v8 = vpop.f32.mrb[152].mxu1 }
 0x39f   :  { %v2837_v42 = vpop.eup %2836  ;;  %v2538_v47 = vpop.f32.mrb[153].mxu1 }
 0x3a0   :  { %v2839_v51 = vpop.eup %2838  ;;  %2266 = vst.msk [vmem:[%s3941_s7 + $0xa8] sm:$0xff] %vm2244_vm1, %v2837_v42  ;;  %2848 = vpow2.f32 %v2432_v38  ;;  %v2539_v52 = vadd.f32 %v2538_v47, %v2537_v8  ;;  %v2540_v53 = vpop.f32.mrb[154].mxu1 }
 0x3a1   :  { %v2172_v23 = vadd.f32 1.0, %v2839_v51  ;;  %v2541_v30 = vpop.f32.mrb[155].mxu1 }
 0x3a2   :  { %v2841_v54 = vpop.eup %2840  ;;  %v2048_v35 = vadd.f32 %v2539_v52, %v3772_v24  ;;  %v2542_v10 = vadd.f32 %v2541_v30, %v2540_v53 }
 0x3a3   :  { %2850 = vrcp.f32 %v2172_v23  ;;  %v2173_v27 = vadd.f32 1.0, %v2841_v54 }
 0x3a4   :  { %v2433_v60 = vmul.f32 -1.442695, %v2048_v35  ;;  %v2049_v62 = vadd.f32 %v2542_v10, %v3772_v24 }
 0x3a5   :  { %v2843_v34 = vpop.eup %2842  ;;  %2852 = vrcp.f32 %v2173_v27 }
 0x3a6   :  { %2267 = vst.msk [vmem:[%s3941_s7 + $0xb0] sm:$0xff] %vm2244_vm1, %v2843_v34  ;;  %2854 = vpow2.f32 %v2433_v60  ;;  %v2434_v63 = vmul.f32 -1.442695, %v2049_v62  ;;  %v2543_v11 = vpop.f32.mrb[156].mxu1 }
 0x3a7   :  { %v2845_v44 = vpop.eup %2844  ;;  %v2544_v16 = vpop.f32.mrb[157].mxu1 }
 0x3a8   :  { %v2847_v45 = vpop.eup %2846  ;;  %2268 = vst.msk [vmem:[%s3941_s7 + $0xb8] sm:$0xff] %vm2244_vm1, %v2845_v44  ;;  %2856 = vpow2.f32 %v2434_v63  ;;  %v2545_v39 = vadd.f32 %v2544_v16, %v2543_v11  ;;  %v2546_v48 = vpop.f32.mrb[158].mxu1 }
 0x3a9   :  { %v2174_v61 = vadd.f32 1.0, %v2847_v45  ;;  %v2547_v31 = vpop.f32.mrb[159].mxu1 }
 0x3aa   :  { %v2849_v20 = vpop.eup %2848  ;;  %v2050_v36 = vadd.f32 %v2545_v39, %v3772_v24  ;;  %v2548_v5 = vadd.f32 %v2547_v31, %v2546_v48 }
 0x3ab   :  { %2858 = vrcp.f32 %v2174_v61  ;;  %v2175_v14 = vadd.f32 1.0, %v2849_v20 }
 0x3ac   :  { %v2435_v19 = vmul.f32 -1.442695, %v2050_v36  ;;  %v2051_v49 = vadd.f32 %v2548_v5, %v3772_v24 }
 0x3ad   :  { %v2851_v13 = vpop.eup %2850  ;;  %2860 = vrcp.f32 %v2175_v14 }
 0x3ae   :  { %2269 = vst.msk [vmem:[%s3941_s7 + $0xc0] sm:$0xff] %vm2244_vm1, %v2851_v13  ;;  %2862 = vpow2.f32 %v2435_v19  ;;  %v2436_v17 = vmul.f32 -1.442695, %v2051_v49 }
 0x3af   :  { %v2853_v41 = vpop.eup %2852 }
 0x3b0   :  { %v2855_v6 = vpop.eup %2854  ;;  %2270 = vst.msk [vmem:[%s3941_s7 + $0xc8] sm:$0xff] %vm2244_vm1, %v2853_v41  ;;  %2864 = vpow2.f32 %v2436_v17 }
 0x3b1   :  { %v2176_v58 = vadd.f32 1.0, %v2855_v6 }
 0x3b2   :  { %v2857_v4 = vpop.eup %2856 }
 0x3b3   :  { %2866 = vrcp.f32 %v2176_v58  ;;  %v2177_v24 = vadd.f32 1.0, %v2857_v4 }
 0x3b5   :  { %v2859_v12 = vpop.eup %2858  ;;  %2868 = vrcp.f32 %v2177_v24 }
 0x3b6   :  { %2271 = vst.msk [vmem:[%s3941_s7 + $0xd0] sm:$0xff] %vm2244_vm1, %v2859_v12 }
 0x3b7   :  { %v2861_v15 = vpop.eup %2860 }
 0x3b8   :  { %v2863_v57 = vpop.eup %2862  ;;  %2272 = vst.msk [vmem:[%s3941_s7 + $0xd8] sm:$0xff] %vm2244_vm1, %v2861_v15 }
 0x3b9   :  { %v2178_v46 = vadd.f32 1.0, %v2863_v57 }
 0x3ba   :  { %v2865_v43 = vpop.eup %2864 }
 0x3bb   :  { %2870 = vrcp.f32 %v2178_v46  ;;  %v2179_v2 = vadd.f32 1.0, %v2865_v43 }
 0x3bd   :  { %v2867_v37 = vpop.eup %2866  ;;  %2872 = vrcp.f32 %v2179_v2 }
 0x3be   :  { %2273 = vst.msk [vmem:[%s3941_s7 + $0xe0] sm:$0xff] %vm2244_vm1, %v2867_v37 }
 0x3bf   :  { %v2869_v0 = vpop.eup %2868 }
 0x3c0   :  { %2274 = vst.msk [vmem:[%s3941_s7 + $0xe8] sm:$0xff] %vm2244_vm1, %v2869_v0 }
 0x3c5   :  { %v2871_v7 = vpop.eup %2870 }
 0x3c6   :  { %2275 = vst.msk [vmem:[%s3941_s7 + $0xf0] sm:$0xff] %vm2244_vm1, %v2871_v7 }
 0x3c7   :  { %v2873_v22 = vpop.eup %2872 }
 0x3c8   :  { %2276 = vst.msk [vmem:[%s3941_s7 + $0xf8] sm:$0xff] %vm2244_vm1, %v2873_v22 }
 0x3c9   :  { %2281 = vsyncpa [#allocation4], 1 }

</bundles_post_ra>
